<compile_context>
chip_gen: v5e
topology: v5e:2x2
jax: 0.10.0
libtpu: 0.0.40
codegen_flags: <defaults>
</compile_context>

<pallas_src>
import functools

import jax
import jax.numpy as jnp
import numpy as np
from jax import lax
from jax.experimental import pallas as pl
from jax.experimental.pallas import tpu as pltpu

LN_EPS = 1e-5  # nn.LayerNorm default


def _layernorm(v, g, b):
    mu = jnp.mean(v, axis=-1, keepdims=True)
    var = jnp.mean((v - mu) ** 2, axis=-1, keepdims=True)
    return (v - mu) * lax.rsqrt(var + LN_EPS) * g + b


def transformer_block_kernel(num_heads,
                             x_ref, p_ref,
                             ln1g_ref, ln1b_ref,
                             wqkv_ref, bqkv_ref,      # (3E,E) bf16, (3E,1) f32
                             wo3_ref, bo_ref,         # (H,HD,E) bf16, (1,E) f32
                             we_ref, be_ref,          # SMEM: (De,H), (1,H) f32
                             ln2g_ref, ln2b_ref,
                             w1_ref, b1_ref,          # (E,M) bf16, (1,M) f32
                             w2_ref, b2_ref,          # (M,E) bf16, (1,E) f32
                             o_ref):
    f32 = jnp.float32
    bf16 = jnp.bfloat16

    x = x_ref[0]                               # (S, E) f32
    S, E = x.shape
    De = p_ref.shape[1]
    H = num_heads
    HD = E // H
    scale = 1.0 / float(HD) ** 0.5             # PyTorch MHA q-scaling

    # ---- attn_norm (LayerNorm 1, f32) ----
    xn = _layernorm(x, ln1g_ref[...], ln1b_ref[...])
    xn_bf = xn.astype(bf16)

    # ---- fused QKV projection: one MXU matmul, transposed (3E, S) layout ----
    # qkv_t[f, s] = sum_e Wqkv_rows[f, e] * xn[s, e]
    qkv_t = lax.dot_general(wqkv_ref[...], xn_bf,
                            (((1,), (1,)), ((), ())),
                            preferred_element_type=f32)
    qkv_t = qkv_t + bqkv_ref[...]              # (3E, S) + (3E, 1)

    # Per-head split is a sublane-only reshape (lane dim S untouched).
    q_t = qkv_t[0:E].reshape(H, HD, S)         # (H, HD, S)
    k_t = qkv_t[E:2 * E].reshape(H, HD, S)
    v_t = qkv_t[2 * E:3 * E].reshape(H, HD, S)

    q3 = (jnp.swapaxes(q_t, 1, 2) * scale).astype(bf16)   # (H, S, HD)
    k_bf = k_t.astype(bf16)                                # (H, HD, S)
    v_bf = v_t.astype(bf16)                                # (H, HD, S)

    # ---- additive per-head edge bias, hoisted: (H, S, S) in f32 ----
    p3 = p_ref[0]                              # (De, S, S)
    planes = []
    for h in range(H):
        acc = p3[0] * we_ref[0, h]
        for d in range(1, De):
            acc = acc + p3[d] * we_ref[d, h]
        planes.append(acc + be_ref[0, h])
    bias = jnp.stack(planes, axis=0)           # (H, S, S) f32

    # ---- batched multi-head attention (single MXU stream over heads) ----
    scores = jnp.einsum('hqd,hdk->hqk', q3, k_bf,
                        preferred_element_type=f32) + bias        # (H, S, S)
    m = jnp.max(scores, axis=-1, keepdims=True)
    e = jnp.exp(scores - m)
    denom = jnp.sum(e, axis=-1, keepdims=True)
    probs = (e * pl.reciprocal(denom, approx=True)).astype(bf16)  # (H, S, S)

    ctx = jnp.einsum('hqk,hdk->hqd', probs, v_bf,
                     preferred_element_type=f32)                  # (H, S, HD)
    proj = jnp.einsum('hqd,hde->hqe', ctx.astype(bf16), wo3_ref[...],
                      preferred_element_type=f32)                 # (H, S, E)
    attn = jnp.sum(proj, axis=0) + bo_ref[...]                    # (S, E)

    x1 = x + attn                                                 # residual 1

    # ---- final_norm + FeedForward (Linear -> SiLU -> Linear) ----
    xn2 = _layernorm(x1, ln2g_ref[...], ln2b_ref[...])
    hid = jnp.dot(xn2.astype(bf16), w1_ref[...],
                  preferred_element_type=f32) + b1_ref[...]
    hid = hid * jax.nn.sigmoid(hid)                               # SiLU (f32)
    ff = jnp.dot(hid.astype(bf16), w2_ref[...],
                 preferred_element_type=f32) + b2_ref[...]

    o_ref[0] = x1 + ff                                            # residual 2


def transformer_block(x, p, params, num_heads):
    """x: (B, S, E) f32; p: (B, S, S, edge_dim) f32 (PyTorch layout)."""
    B, S, E = x.shape
    De = p.shape[-1]
    M = params["w1"].shape[1]
    H = num_heads
    HD = E // H
    bf16 = jnp.bfloat16

    # Edge features as (B, De, S, S): (S, S) bias planes land in (sublane, lane).
    pt = jnp.transpose(p, (0, 3, 1, 2))

    # Kernel-layout parameters (weights in bf16 => half the weight DMA bytes).
    wqkv_r = params["wqkv"].T.astype(bf16)                 # (3E, E)
    bqkv_c = params["bqkv"].reshape(3 * E, 1)              # (3E, 1) f32
    wo3 = params["wo"].reshape(H, HD, E).astype(bf16)      # (H, HD, E)
    bo2 = params["bo"].reshape(1, E)
    we = params["we"]                                      # (De, H) f32 (SMEM)
    be2 = params["be"].reshape(1, H)                       # (1, H) f32 (SMEM)
    ln1g = params["ln1_g"].reshape(1, E)
    ln1b = params["ln1_b"].reshape(1, E)
    ln2g = params["ln2_g"].reshape(1, E)
    ln2b = params["ln2_b"].reshape(1, E)
    w1 = params["w1"].astype(bf16)                         # (E, M)
    b1 = params["b1"].reshape(1, M)
    w2 = params["w2"].astype(bf16)                         # (M, E)
    b2 = params["b2"].reshape(1, E)

    kernel = functools.partial(transformer_block_kernel, num_heads)

    def const_spec(shape):
        n = len(shape)
        return pl.BlockSpec(shape, lambda b, _n=n: (0,) * _n)

    smem_spec = pl.BlockSpec(memory_space=pltpu.MemorySpace.SMEM)

    in_specs = [
        pl.BlockSpec((1, S, E), lambda b: (b, 0, 0)),          # x
        pl.BlockSpec((1, De, S, S), lambda b: (b, 0, 0, 0)),   # p (De-major)
        const_spec((1, E)), const_spec((1, E)),                # ln1 gamma/beta
        const_spec((3 * E, E)), const_spec((3 * E, 1)),        # in_proj W/b
        const_spec((H, HD, E)), const_spec((1, E)),            # out_proj W/b
        smem_spec, smem_spec,                                  # edge_to_bias W/b
        const_spec((1, E)), const_spec((1, E)),                # ln2 gamma/beta
        const_spec((E, M)), const_spec((1, M)),                # ff W1/b1
        const_spec((M, E)), const_spec((1, E)),                # ff W2/b2
    ]
    out_spec = pl.BlockSpec((1, S, E), lambda b: (b, 0, 0))

    return pl.pallas_call(
        kernel,
        out_shape=jax.ShapeDtypeStruct((B, S, E), jnp.float32),
        grid_spec=pltpu.PrefetchScalarGridSpec(
            num_scalar_prefetch=0,
            grid=(B,),
            in_specs=in_specs,
            out_specs=out_spec,
        ),
        compiler_params=pltpu.CompilerParams(dimension_semantics=("parallel",)),
    )(x, pt,
      ln1g, ln1b,
      wqkv_r, bqkv_c,
      wo3, bo2,
      we, be2,
      ln2g, ln2b,
      w1, b1,
      w2, b2)


def init_params(key, E, De, M, H):
    ks = jax.random.split(key, 10)

    def w(k, shape, scale=0.1):
        return (scale * jax.random.normal(k, shape)).astype(jnp.float32)

    return dict(
        ln1_g=jnp.ones((E,), jnp.float32), ln1_b=jnp.zeros((E,), jnp.float32),
        wqkv=w(ks[0], (E, 3 * E)), bqkv=w(ks[1], (3 * E,)),
        wo=w(ks[2], (E, E)), bo=w(ks[3], (E,)),
        we=w(ks[4], (De, H)), be=w(ks[5], (H,)),
        ln2_g=jnp.ones((E,), jnp.float32), ln2_b=jnp.zeros((E,), jnp.float32),
        w1=w(ks[6], (E, M)), b1=w(ks[7], (M,)),
        w2=w(ks[8], (M, E)), b2=w(ks[9], (E,)),
    )


def reference(x, p, params, H):
    """Pure-JAX (f32) mirror of the PyTorch forward (for verification)."""
    def ln(v, g, b):
        mu = v.mean(-1, keepdims=True)
        var = ((v - mu) ** 2).mean(-1, keepdims=True)
        return (v - mu) / jnp.sqrt(var + LN_EPS) * g + b

    B, S, E = x.shape
    HD = E // H
    xn = ln(x, params["ln1_g"], params["ln1_b"])
    qkv = xn @ params["wqkv"] + params["bqkv"]
    q, k, v = jnp.split(qkv, 3, axis=-1)
    qh = q.reshape(B, S, H, HD).transpose(0, 2, 1, 3)
    kh = k.reshape(B, S, H, HD).transpose(0, 2, 1, 3)
    vh = v.reshape(B, S, H, HD).transpose(0, 2, 1, 3)
    bias = p @ params["we"] + params["be"]               # (B, S, S, H)
    bias = bias.transpose(0, 3, 1, 2)                    # (B, H, S, S)
    s = jnp.einsum("bhqd,bhkd->bhqk", qh, kh) / jnp.sqrt(HD) + bias
    w = jax.nn.softmax(s, axis=-1)
    o = jnp.einsum("bhqk,bhkd->bhqd", w, vh).transpose(0, 2, 1, 3).reshape(B, S, E)
    o = o @ params["wo"] + params["bo"]
    x1 = x + o
    xn2 = ln(x1, params["ln2_g"], params["ln2_b"])
    hid = xn2 @ params["w1"] + params["b1"]
    hid = hid * jax.nn.sigmoid(hid)
    ff = hid @ params["w2"] + params["b2"]
    return x1 + ff


if __name__ == "__main__":
    # batch, seq, embed, edge_dim, mlp_dim, heads  (HD = E//H = 8)
    B, S, E, De, M, H = 2, 8, 32, 4, 64, 4

    key = jax.random.PRNGKey(0)
    kx, kp, kw = jax.random.split(key, 3)
    x = jax.random.normal(kx, (B, S, E), dtype=jnp.float32)
    p = jax.random.normal(kp, (B, S, S, De), dtype=jnp.float32)
    params = init_params(kw, E, De, M, H)

    out = transformer_block(x, p, params, num_heads=H)
    out = jax.block_until_ready(out)

    ref = reference(x, p, params, H)
    # bf16 matmul operands (f32 accumulation) => slightly looser tolerance.
    np.testing.assert_allclose(np.asarray(out), np.asarray(ref),
                               atol=3e-2, rtol=3e-2)

    print("KERNEL_OK")
</pallas_src>

<mosaic_0001>
module attributes {stable_mosaic.version = 11 : i64} {
  func.func @transformer_block_kernel(%arg0: i32, %arg1: memref<1x8x32xf32, #tpu.memory_space<vmem>>, %arg2: memref<1x4x8x8xf32, #tpu.memory_space<vmem>>, %arg3: memref<1x32xf32, #tpu.memory_space<vmem>>, %arg4: memref<1x32xf32, #tpu.memory_space<vmem>>, %arg5: memref<96x32xbf16, #tpu.memory_space<vmem>>, %arg6: memref<96x1xf32, #tpu.memory_space<vmem>>, %arg7: memref<4x8x32xbf16, #tpu.memory_space<vmem>>, %arg8: memref<1x32xf32, #tpu.memory_space<vmem>>, %arg9: memref<4x4xf32, #tpu.memory_space<smem>>, %arg10: memref<1x4xf32, #tpu.memory_space<smem>>, %arg11: memref<1x32xf32, #tpu.memory_space<vmem>>, %arg12: memref<1x32xf32, #tpu.memory_space<vmem>>, %arg13: memref<32x64xbf16, #tpu.memory_space<vmem>>, %arg14: memref<1x64xf32, #tpu.memory_space<vmem>>, %arg15: memref<64x32xbf16, #tpu.memory_space<vmem>>, %arg16: memref<1x32xf32, #tpu.memory_space<vmem>>, %arg17: memref<1x8x32xf32, #tpu.memory_space<vmem>>) attributes {dimension_semantics = [#tpu.dimension_semantics<parallel>], iteration_bounds = array<i64: 2>, scalar_prefetch = 0 : i64, scratch_operands = 0 : i64, tpu.core_type = #tpu.core_type<tc>, window_params = [{transform_indices = @transform_0, window_bounds = array<i64: 1, 8, 32>}, {transform_indices = @transform_1, window_bounds = array<i64: 1, 4, 8, 8>}, {pipeline_mode = #tpu.pipeline_mode<synchronous>, transform_indices = @transform_2, window_bounds = array<i64: 1, 32>}, {pipeline_mode = #tpu.pipeline_mode<synchronous>, transform_indices = @transform_3, window_bounds = array<i64: 1, 32>}, {pipeline_mode = #tpu.pipeline_mode<synchronous>, transform_indices = @transform_4, window_bounds = array<i64: 96, 32>}, {pipeline_mode = #tpu.pipeline_mode<synchronous>, transform_indices = @transform_5, window_bounds = array<i64: 96, 1>}, {pipeline_mode = #tpu.pipeline_mode<synchronous>, transform_indices = @transform_6, window_bounds = array<i64: 4, 8, 32>}, {pipeline_mode = #tpu.pipeline_mode<synchronous>, transform_indices = @transform_7, window_bounds = array<i64: 1, 32>}, {transform_indices = @transform_8, window_bounds = array<i64: 4, 4>}, {transform_indices = @transform_9, window_bounds = array<i64: 1, 4>}, {pipeline_mode = #tpu.pipeline_mode<synchronous>, transform_indices = @transform_10, window_bounds = array<i64: 1, 32>}, {pipeline_mode = #tpu.pipeline_mode<synchronous>, transform_indices = @transform_11, window_bounds = array<i64: 1, 32>}, {pipeline_mode = #tpu.pipeline_mode<synchronous>, transform_indices = @transform_12, window_bounds = array<i64: 32, 64>}, {pipeline_mode = #tpu.pipeline_mode<synchronous>, transform_indices = @transform_13, window_bounds = array<i64: 1, 64>}, {pipeline_mode = #tpu.pipeline_mode<synchronous>, transform_indices = @transform_14, window_bounds = array<i64: 64, 32>}, {pipeline_mode = #tpu.pipeline_mode<synchronous>, transform_indices = @transform_15, window_bounds = array<i64: 1, 32>}, {transform_indices = @transform_16, window_bounds = array<i64: 1, 8, 32>}]} {
    %c0 = arith.constant 0 : index
    %c0_0 = arith.constant 0 : index
    %c0_1 = arith.constant 0 : index
    %0 = vector.load %arg1[%c0, %c0_0, %c0_1] : memref<1x8x32xf32, #tpu.memory_space<vmem>>, vector<1x8x32xf32>
    %1 = vector.shape_cast %0 : vector<1x8x32xf32> to vector<8x32xf32>
    %c0_2 = arith.constant 0 : index
    %c0_3 = arith.constant 0 : index
    %2 = vector.load %arg3[%c0_2, %c0_3] : memref<1x32xf32, #tpu.memory_space<vmem>>, vector<1x32xf32>
    %c0_4 = arith.constant 0 : index
    %c0_5 = arith.constant 0 : index
    %3 = vector.load %arg4[%c0_4, %c0_5] : memref<1x32xf32, #tpu.memory_space<vmem>>, vector<1x32xf32>
    %cst = arith.constant dense<0.000000e+00> : vector<8xf32>
    %4 = vector.multi_reduction <add>, %1, %cst [1] : vector<8x32xf32> to vector<8xf32>
    %5 = vector.shape_cast %4 : vector<8xf32> to vector<8x1xf32>
    %cst_6 = arith.constant 3.200000e+01 : f32
    %6 = vector.broadcast %cst_6 : f32 to vector<8x1xf32>
    %7 = arith.divf %5, %6 : vector<8x1xf32>
    %8 = vector.broadcast %7 : vector<8x1xf32> to vector<8x32xf32>
    %9 = arith.subf %1, %8 : vector<8x32xf32>
    %10 = arith.mulf %9, %9 : vector<8x32xf32>
    %cst_7 = arith.constant dense<0.000000e+00> : vector<8xf32>
    %11 = vector.multi_reduction <add>, %10, %cst_7 [1] : vector<8x32xf32> to vector<8xf32>
    %12 = vector.shape_cast %11 : vector<8xf32> to vector<8x1xf32>
    %cst_8 = arith.constant 3.200000e+01 : f32
    %13 = vector.broadcast %cst_8 : f32 to vector<8x1xf32>
    %14 = arith.divf %12, %13 : vector<8x1xf32>
    %15 = vector.broadcast %7 : vector<8x1xf32> to vector<8x32xf32>
    %16 = arith.subf %1, %15 : vector<8x32xf32>
    %cst_9 = arith.constant 9.99999974E-6 : f32
    %17 = vector.broadcast %cst_9 : f32 to vector<8x1xf32>
    %18 = arith.addf %14, %17 : vector<8x1xf32>
    %19 = math.rsqrt %18 : vector<8x1xf32>
    %20 = vector.broadcast %19 : vector<8x1xf32> to vector<8x32xf32>
    %21 = arith.mulf %16, %20 : vector<8x32xf32>
    %22 = vector.broadcast %2 : vector<1x32xf32> to vector<8x32xf32>
    %23 = arith.mulf %21, %22 : vector<8x32xf32>
    %24 = vector.broadcast %3 : vector<1x32xf32> to vector<8x32xf32>
    %25 = arith.addf %23, %24 : vector<8x32xf32>
    %26 = arith.truncf %25 : vector<8x32xf32> to vector<8x32xbf16>
    %c0_10 = arith.constant 0 : index
    %c0_11 = arith.constant 0 : index
    %27 = vector.load %arg5[%c0_10, %c0_11] : memref<96x32xbf16, #tpu.memory_space<vmem>>, vector<96x32xbf16>
    %cst_12 = arith.constant dense<0.000000e+00> : vector<96x8xf32>
    %28 = tpu.matmul %27, %26, %cst_12 {dimension_numbers = #tpu.dot_dimension_numbers<[1], [1], [0], [0], [0, 0, 1, 0], [], []>} : vector<96x32xbf16>, vector<8x32xbf16>, vector<96x8xf32> -> vector<96x8xf32>
    %c0_13 = arith.constant 0 : index
    %c0_14 = arith.constant 0 : index
    %29 = vector.load %arg6[%c0_13, %c0_14] : memref<96x1xf32, #tpu.memory_space<vmem>>, vector<96x1xf32>
    %30 = vector.broadcast %29 : vector<96x1xf32> to vector<96x8xf32>
    %31 = arith.addf %28, %30 : vector<96x8xf32>
    %32 = vector.extract_strided_slice %31 {offsets = [0, 0], sizes = [32, 8], strides = [1, 1]} : vector<96x8xf32> to vector<32x8xf32>
    %33 = vector.shape_cast %32 : vector<32x8xf32> to vector<4x8x8xf32>
    %34 = vector.extract_strided_slice %31 {offsets = [32, 0], sizes = [32, 8], strides = [1, 1]} : vector<96x8xf32> to vector<32x8xf32>
    %35 = vector.shape_cast %34 : vector<32x8xf32> to vector<4x8x8xf32>
    %36 = vector.extract_strided_slice %31 {offsets = [64, 0], sizes = [32, 8], strides = [1, 1]} : vector<96x8xf32> to vector<32x8xf32>
    %37 = vector.shape_cast %36 : vector<32x8xf32> to vector<4x8x8xf32>
    %38 = tpu.transpose %33, [0, 2, 1] : vector<4x8x8xf32> -> vector<4x8x8xf32>
    %cst_15 = arith.constant 0.353553385 : f32
    %39 = vector.broadcast %cst_15 : f32 to vector<4x8x8xf32>
    %40 = arith.mulf %38, %39 : vector<4x8x8xf32>
    %41 = arith.truncf %40 : vector<4x8x8xf32> to vector<4x8x8xbf16>
    %42 = arith.truncf %35 : vector<4x8x8xf32> to vector<4x8x8xbf16>
    %43 = arith.truncf %37 : vector<4x8x8xf32> to vector<4x8x8xbf16>
    %c0_16 = arith.constant 0 : index
    %c0_17 = arith.constant 0 : index
    %c0_18 = arith.constant 0 : index
    %c0_19 = arith.constant 0 : index
    %44 = vector.load %arg2[%c0_16, %c0_17, %c0_18, %c0_19] : memref<1x4x8x8xf32, #tpu.memory_space<vmem>>, vector<1x4x8x8xf32>
    %45 = vector.shape_cast %44 : vector<1x4x8x8xf32> to vector<4x8x8xf32>
    %46 = vector.extract_strided_slice %45 {offsets = [0, 0, 0], sizes = [1, 8, 8], strides = [1, 1, 1]} : vector<4x8x8xf32> to vector<1x8x8xf32>
    %47 = vector.shape_cast %46 : vector<1x8x8xf32> to vector<8x8xf32>
    %c0_20 = arith.constant 0 : index
    %c0_21 = arith.constant 0 : index
    %48 = memref.load %arg9[%c0_20, %c0_21] : memref<4x4xf32, #tpu.memory_space<smem>>
    %49 = vector.broadcast %48 : f32 to vector<8x8xf32>
    %50 = arith.mulf %47, %49 : vector<8x8xf32>
    %51 = vector.extract_strided_slice %45 {offsets = [1, 0, 0], sizes = [1, 8, 8], strides = [1, 1, 1]} : vector<4x8x8xf32> to vector<1x8x8xf32>
    %52 = vector.shape_cast %51 : vector<1x8x8xf32> to vector<8x8xf32>
    %c1 = arith.constant 1 : index
    %c0_22 = arith.constant 0 : index
    %53 = memref.load %arg9[%c1, %c0_22] : memref<4x4xf32, #tpu.memory_space<smem>>
    %54 = vector.broadcast %53 : f32 to vector<8x8xf32>
    %55 = arith.mulf %52, %54 : vector<8x8xf32>
    %56 = arith.addf %50, %55 : vector<8x8xf32>
    %57 = vector.extract_strided_slice %45 {offsets = [2, 0, 0], sizes = [1, 8, 8], strides = [1, 1, 1]} : vector<4x8x8xf32> to vector<1x8x8xf32>
    %58 = vector.shape_cast %57 : vector<1x8x8xf32> to vector<8x8xf32>
    %c2 = arith.constant 2 : index
    %c0_23 = arith.constant 0 : index
    %59 = memref.load %arg9[%c2, %c0_23] : memref<4x4xf32, #tpu.memory_space<smem>>
    %60 = vector.broadcast %59 : f32 to vector<8x8xf32>
    %61 = arith.mulf %58, %60 : vector<8x8xf32>
    %62 = arith.addf %56, %61 : vector<8x8xf32>
    %63 = vector.extract_strided_slice %45 {offsets = [3, 0, 0], sizes = [1, 8, 8], strides = [1, 1, 1]} : vector<4x8x8xf32> to vector<1x8x8xf32>
    %64 = vector.shape_cast %63 : vector<1x8x8xf32> to vector<8x8xf32>
    %c3 = arith.constant 3 : index
    %c0_24 = arith.constant 0 : index
    %65 = memref.load %arg9[%c3, %c0_24] : memref<4x4xf32, #tpu.memory_space<smem>>
    %66 = vector.broadcast %65 : f32 to vector<8x8xf32>
    %67 = arith.mulf %64, %66 : vector<8x8xf32>
    %68 = arith.addf %62, %67 : vector<8x8xf32>
    %c0_25 = arith.constant 0 : index
    %c0_26 = arith.constant 0 : index
    %69 = memref.load %arg10[%c0_25, %c0_26] : memref<1x4xf32, #tpu.memory_space<smem>>
    %70 = vector.broadcast %69 : f32 to vector<8x8xf32>
    %71 = arith.addf %68, %70 : vector<8x8xf32>
    %72 = vector.extract_strided_slice %45 {offsets = [0, 0, 0], sizes = [1, 8, 8], strides = [1, 1, 1]} : vector<4x8x8xf32> to vector<1x8x8xf32>
    %73 = vector.shape_cast %72 : vector<1x8x8xf32> to vector<8x8xf32>
    %c0_27 = arith.constant 0 : index
    %c1_28 = arith.constant 1 : index
    %74 = memref.load %arg9[%c0_27, %c1_28] : memref<4x4xf32, #tpu.memory_space<smem>>
    %75 = vector.broadcast %74 : f32 to vector<8x8xf32>
    %76 = arith.mulf %73, %75 : vector<8x8xf32>
    %77 = vector.extract_strided_slice %45 {offsets = [1, 0, 0], sizes = [1, 8, 8], strides = [1, 1, 1]} : vector<4x8x8xf32> to vector<1x8x8xf32>
    %78 = vector.shape_cast %77 : vector<1x8x8xf32> to vector<8x8xf32>
    %c1_29 = arith.constant 1 : index
    %c1_30 = arith.constant 1 : index
    %79 = memref.load %arg9[%c1_29, %c1_30] : memref<4x4xf32, #tpu.memory_space<smem>>
    %80 = vector.broadcast %79 : f32 to vector<8x8xf32>
    %81 = arith.mulf %78, %80 : vector<8x8xf32>
    %82 = arith.addf %76, %81 : vector<8x8xf32>
    %83 = vector.extract_strided_slice %45 {offsets = [2, 0, 0], sizes = [1, 8, 8], strides = [1, 1, 1]} : vector<4x8x8xf32> to vector<1x8x8xf32>
    %84 = vector.shape_cast %83 : vector<1x8x8xf32> to vector<8x8xf32>
    %c2_31 = arith.constant 2 : index
    %c1_32 = arith.constant 1 : index
    %85 = memref.load %arg9[%c2_31, %c1_32] : memref<4x4xf32, #tpu.memory_space<smem>>
    %86 = vector.broadcast %85 : f32 to vector<8x8xf32>
    %87 = arith.mulf %84, %86 : vector<8x8xf32>
    %88 = arith.addf %82, %87 : vector<8x8xf32>
    %89 = vector.extract_strided_slice %45 {offsets = [3, 0, 0], sizes = [1, 8, 8], strides = [1, 1, 1]} : vector<4x8x8xf32> to vector<1x8x8xf32>
    %90 = vector.shape_cast %89 : vector<1x8x8xf32> to vector<8x8xf32>
    %c3_33 = arith.constant 3 : index
    %c1_34 = arith.constant 1 : index
    %91 = memref.load %arg9[%c3_33, %c1_34] : memref<4x4xf32, #tpu.memory_space<smem>>
    %92 = vector.broadcast %91 : f32 to vector<8x8xf32>
    %93 = arith.mulf %90, %92 : vector<8x8xf32>
    %94 = arith.addf %88, %93 : vector<8x8xf32>
    %c0_35 = arith.constant 0 : index
    %c1_36 = arith.constant 1 : index
    %95 = memref.load %arg10[%c0_35, %c1_36] : memref<1x4xf32, #tpu.memory_space<smem>>
    %96 = vector.broadcast %95 : f32 to vector<8x8xf32>
    %97 = arith.addf %94, %96 : vector<8x8xf32>
    %98 = vector.extract_strided_slice %45 {offsets = [0, 0, 0], sizes = [1, 8, 8], strides = [1, 1, 1]} : vector<4x8x8xf32> to vector<1x8x8xf32>
    %99 = vector.shape_cast %98 : vector<1x8x8xf32> to vector<8x8xf32>
    %c0_37 = arith.constant 0 : index
    %c2_38 = arith.constant 2 : index
    %100 = memref.load %arg9[%c0_37, %c2_38] : memref<4x4xf32, #tpu.memory_space<smem>>
    %101 = vector.broadcast %100 : f32 to vector<8x8xf32>
    %102 = arith.mulf %99, %101 : vector<8x8xf32>
    %103 = vector.extract_strided_slice %45 {offsets = [1, 0, 0], sizes = [1, 8, 8], strides = [1, 1, 1]} : vector<4x8x8xf32> to vector<1x8x8xf32>
    %104 = vector.shape_cast %103 : vector<1x8x8xf32> to vector<8x8xf32>
    %c1_39 = arith.constant 1 : index
    %c2_40 = arith.constant 2 : index
    %105 = memref.load %arg9[%c1_39, %c2_40] : memref<4x4xf32, #tpu.memory_space<smem>>
    %106 = vector.broadcast %105 : f32 to vector<8x8xf32>
    %107 = arith.mulf %104, %106 : vector<8x8xf32>
    %108 = arith.addf %102, %107 : vector<8x8xf32>
    %109 = vector.extract_strided_slice %45 {offsets = [2, 0, 0], sizes = [1, 8, 8], strides = [1, 1, 1]} : vector<4x8x8xf32> to vector<1x8x8xf32>
    %110 = vector.shape_cast %109 : vector<1x8x8xf32> to vector<8x8xf32>
    %c2_41 = arith.constant 2 : index
    %c2_42 = arith.constant 2 : index
    %111 = memref.load %arg9[%c2_41, %c2_42] : memref<4x4xf32, #tpu.memory_space<smem>>
    %112 = vector.broadcast %111 : f32 to vector<8x8xf32>
    %113 = arith.mulf %110, %112 : vector<8x8xf32>
    %114 = arith.addf %108, %113 : vector<8x8xf32>
    %115 = vector.extract_strided_slice %45 {offsets = [3, 0, 0], sizes = [1, 8, 8], strides = [1, 1, 1]} : vector<4x8x8xf32> to vector<1x8x8xf32>
    %116 = vector.shape_cast %115 : vector<1x8x8xf32> to vector<8x8xf32>
    %c3_43 = arith.constant 3 : index
    %c2_44 = arith.constant 2 : index
    %117 = memref.load %arg9[%c3_43, %c2_44] : memref<4x4xf32, #tpu.memory_space<smem>>
    %118 = vector.broadcast %117 : f32 to vector<8x8xf32>
    %119 = arith.mulf %116, %118 : vector<8x8xf32>
    %120 = arith.addf %114, %119 : vector<8x8xf32>
    %c0_45 = arith.constant 0 : index
    %c2_46 = arith.constant 2 : index
    %121 = memref.load %arg10[%c0_45, %c2_46] : memref<1x4xf32, #tpu.memory_space<smem>>
    %122 = vector.broadcast %121 : f32 to vector<8x8xf32>
    %123 = arith.addf %120, %122 : vector<8x8xf32>
    %124 = vector.extract_strided_slice %45 {offsets = [0, 0, 0], sizes = [1, 8, 8], strides = [1, 1, 1]} : vector<4x8x8xf32> to vector<1x8x8xf32>
    %125 = vector.shape_cast %124 : vector<1x8x8xf32> to vector<8x8xf32>
    %c0_47 = arith.constant 0 : index
    %c3_48 = arith.constant 3 : index
    %126 = memref.load %arg9[%c0_47, %c3_48] : memref<4x4xf32, #tpu.memory_space<smem>>
    %127 = vector.broadcast %126 : f32 to vector<8x8xf32>
    %128 = arith.mulf %125, %127 : vector<8x8xf32>
    %129 = vector.extract_strided_slice %45 {offsets = [1, 0, 0], sizes = [1, 8, 8], strides = [1, 1, 1]} : vector<4x8x8xf32> to vector<1x8x8xf32>
    %130 = vector.shape_cast %129 : vector<1x8x8xf32> to vector<8x8xf32>
    %c1_49 = arith.constant 1 : index
    %c3_50 = arith.constant 3 : index
    %131 = memref.load %arg9[%c1_49, %c3_50] : memref<4x4xf32, #tpu.memory_space<smem>>
    %132 = vector.broadcast %131 : f32 to vector<8x8xf32>
    %133 = arith.mulf %130, %132 : vector<8x8xf32>
    %134 = arith.addf %128, %133 : vector<8x8xf32>
    %135 = vector.extract_strided_slice %45 {offsets = [2, 0, 0], sizes = [1, 8, 8], strides = [1, 1, 1]} : vector<4x8x8xf32> to vector<1x8x8xf32>
    %136 = vector.shape_cast %135 : vector<1x8x8xf32> to vector<8x8xf32>
    %c2_51 = arith.constant 2 : index
    %c3_52 = arith.constant 3 : index
    %137 = memref.load %arg9[%c2_51, %c3_52] : memref<4x4xf32, #tpu.memory_space<smem>>
    %138 = vector.broadcast %137 : f32 to vector<8x8xf32>
    %139 = arith.mulf %136, %138 : vector<8x8xf32>
    %140 = arith.addf %134, %139 : vector<8x8xf32>
    %141 = vector.extract_strided_slice %45 {offsets = [3, 0, 0], sizes = [1, 8, 8], strides = [1, 1, 1]} : vector<4x8x8xf32> to vector<1x8x8xf32>
    %142 = vector.shape_cast %141 : vector<1x8x8xf32> to vector<8x8xf32>
    %c3_53 = arith.constant 3 : index
    %c3_54 = arith.constant 3 : index
    %143 = memref.load %arg9[%c3_53, %c3_54] : memref<4x4xf32, #tpu.memory_space<smem>>
    %144 = vector.broadcast %143 : f32 to vector<8x8xf32>
    %145 = arith.mulf %142, %144 : vector<8x8xf32>
    %146 = arith.addf %140, %145 : vector<8x8xf32>
    %c0_55 = arith.constant 0 : index
    %c3_56 = arith.constant 3 : index
    %147 = memref.load %arg10[%c0_55, %c3_56] : memref<1x4xf32, #tpu.memory_space<smem>>
    %148 = vector.broadcast %147 : f32 to vector<8x8xf32>
    %149 = arith.addf %146, %148 : vector<8x8xf32>
    %150 = vector.shape_cast %71 : vector<8x8xf32> to vector<1x8x8xf32>
    %151 = vector.shape_cast %97 : vector<8x8xf32> to vector<1x8x8xf32>
    %152 = vector.shape_cast %123 : vector<8x8xf32> to vector<1x8x8xf32>
    %153 = vector.shape_cast %149 : vector<8x8xf32> to vector<1x8x8xf32>
    %154 = tpu.concatenate %150, %151, %152, %153 in 0 : vector<1x8x8xf32>, vector<1x8x8xf32>, vector<1x8x8xf32>, vector<1x8x8xf32> -> vector<4x8x8xf32>
    "tpu.trace_start"() <{level = 10 : i32, message = "hqd,hdk->hqk"}> : () -> ()
    %cst_57 = arith.constant dense<0.000000e+00> : vector<4x8x8xf32>
    %155 = tpu.matmul %41, %42, %cst_57 {dimension_numbers = #tpu.dot_dimension_numbers<[2], [1], [1], [2], [0, 0, 0, 1, 1, 2], [0], [0]>} : vector<4x8x8xbf16>, vector<4x8x8xbf16>, vector<4x8x8xf32> -> vector<4x8x8xf32>
    "tpu.trace_stop"() : () -> ()
    %156 = arith.addf %155, %154 : vector<4x8x8xf32>
    %cst_58 = arith.constant dense<0xFF800000> : vector<4x8xf32>
    %157 = vector.multi_reduction <maximumf>, %156, %cst_58 [2] : vector<4x8x8xf32> to vector<4x8xf32>
    %158 = vector.shape_cast %157 : vector<4x8xf32> to vector<4x8x1xf32>
    %159 = vector.broadcast %158 : vector<4x8x1xf32> to vector<4x8x8xf32>
    %160 = arith.subf %156, %159 : vector<4x8x8xf32>
    %161 = math.exp %160 : vector<4x8x8xf32>
    %cst_59 = arith.constant dense<0.000000e+00> : vector<4x8xf32>
    %162 = vector.multi_reduction <add>, %161, %cst_59 [2] : vector<4x8x8xf32> to vector<4x8xf32>
    %163 = vector.shape_cast %162 : vector<4x8xf32> to vector<4x8x1xf32>
    %164 = tpu.reciprocal %163 {approx = true} : vector<4x8x1xf32> -> vector<4x8x1xf32>
    %165 = vector.broadcast %164 : vector<4x8x1xf32> to vector<4x8x8xf32>
    %166 = arith.mulf %161, %165 : vector<4x8x8xf32>
    %167 = arith.truncf %166 : vector<4x8x8xf32> to vector<4x8x8xbf16>
    "tpu.trace_start"() <{level = 10 : i32, message = "hqk,hdk->hqd"}> : () -> ()
    %cst_60 = arith.constant dense<0.000000e+00> : vector<4x8x8xf32>
    %168 = tpu.matmul %167, %43, %cst_60 {dimension_numbers = #tpu.dot_dimension_numbers<[2], [2], [1], [1], [0, 0, 0, 1, 1, 1], [0], [0]>} : vector<4x8x8xbf16>, vector<4x8x8xbf16>, vector<4x8x8xf32> -> vector<4x8x8xf32>
    "tpu.trace_stop"() : () -> ()
    %169 = arith.truncf %168 : vector<4x8x8xf32> to vector<4x8x8xbf16>
    %c0_61 = arith.constant 0 : index
    %c0_62 = arith.constant 0 : index
    %c0_63 = arith.constant 0 : index
    %170 = vector.load %arg7[%c0_61, %c0_62, %c0_63] : memref<4x8x32xbf16, #tpu.memory_space<vmem>>, vector<4x8x32xbf16>
    "tpu.trace_start"() <{level = 10 : i32, message = "hqd,hde->hqe"}> : () -> ()
    %cst_64 = arith.constant dense<0.000000e+00> : vector<4x8x32xf32>
    %171 = tpu.matmul %169, %170, %cst_64 {dimension_numbers = #tpu.dot_dimension_numbers<[2], [1], [1], [2], [0, 0, 0, 1, 1, 2], [0], [0]>} : vector<4x8x8xbf16>, vector<4x8x32xbf16>, vector<4x8x32xf32> -> vector<4x8x32xf32>
    "tpu.trace_stop"() : () -> ()
    %cst_65 = arith.constant dense<0.000000e+00> : vector<8x32xf32>
    %172 = vector.multi_reduction <add>, %171, %cst_65 [0] : vector<4x8x32xf32> to vector<8x32xf32>
    %c0_66 = arith.constant 0 : index
    %c0_67 = arith.constant 0 : index
    %173 = vector.load %arg8[%c0_66, %c0_67] : memref<1x32xf32, #tpu.memory_space<vmem>>, vector<1x32xf32>
    %174 = vector.broadcast %173 : vector<1x32xf32> to vector<8x32xf32>
    %175 = arith.addf %172, %174 : vector<8x32xf32>
    %176 = arith.addf %1, %175 : vector<8x32xf32>
    %c0_68 = arith.constant 0 : index
    %c0_69 = arith.constant 0 : index
    %177 = vector.load %arg11[%c0_68, %c0_69] : memref<1x32xf32, #tpu.memory_space<vmem>>, vector<1x32xf32>
    %c0_70 = arith.constant 0 : index
    %c0_71 = arith.constant 0 : index
    %178 = vector.load %arg12[%c0_70, %c0_71] : memref<1x32xf32, #tpu.memory_space<vmem>>, vector<1x32xf32>
    %cst_72 = arith.constant dense<0.000000e+00> : vector<8xf32>
    %179 = vector.multi_reduction <add>, %176, %cst_72 [1] : vector<8x32xf32> to vector<8xf32>
    %180 = vector.shape_cast %179 : vector<8xf32> to vector<8x1xf32>
    %cst_73 = arith.constant 3.200000e+01 : f32
    %181 = vector.broadcast %cst_73 : f32 to vector<8x1xf32>
    %182 = arith.divf %180, %181 : vector<8x1xf32>
    %183 = vector.broadcast %182 : vector<8x1xf32> to vector<8x32xf32>
    %184 = arith.subf %176, %183 : vector<8x32xf32>
    %185 = arith.mulf %184, %184 : vector<8x32xf32>
    %cst_74 = arith.constant dense<0.000000e+00> : vector<8xf32>
    %186 = vector.multi_reduction <add>, %185, %cst_74 [1] : vector<8x32xf32> to vector<8xf32>
    %187 = vector.shape_cast %186 : vector<8xf32> to vector<8x1xf32>
    %cst_75 = arith.constant 3.200000e+01 : f32
    %188 = vector.broadcast %cst_75 : f32 to vector<8x1xf32>
    %189 = arith.divf %187, %188 : vector<8x1xf32>
    %190 = vector.broadcast %182 : vector<8x1xf32> to vector<8x32xf32>
    %191 = arith.subf %176, %190 : vector<8x32xf32>
    %cst_76 = arith.constant 9.99999974E-6 : f32
    %192 = vector.broadcast %cst_76 : f32 to vector<8x1xf32>
    %193 = arith.addf %189, %192 : vector<8x1xf32>
    %194 = math.rsqrt %193 : vector<8x1xf32>
    %195 = vector.broadcast %194 : vector<8x1xf32> to vector<8x32xf32>
    %196 = arith.mulf %191, %195 : vector<8x32xf32>
    %197 = vector.broadcast %177 : vector<1x32xf32> to vector<8x32xf32>
    %198 = arith.mulf %196, %197 : vector<8x32xf32>
    %199 = vector.broadcast %178 : vector<1x32xf32> to vector<8x32xf32>
    %200 = arith.addf %198, %199 : vector<8x32xf32>
    %201 = arith.truncf %200 : vector<8x32xf32> to vector<8x32xbf16>
    %c0_77 = arith.constant 0 : index
    %c0_78 = arith.constant 0 : index
    %202 = vector.load %arg13[%c0_77, %c0_78] : memref<32x64xbf16, #tpu.memory_space<vmem>>, vector<32x64xbf16>
    %cst_79 = arith.constant dense<0.000000e+00> : vector<8x64xf32>
    %203 = tpu.matmul %201, %202, %cst_79 {dimension_numbers = #tpu.dot_dimension_numbers<[1], [0], [0], [1], [0, 0, 1, 1], [], []>} : vector<8x32xbf16>, vector<32x64xbf16>, vector<8x64xf32> -> vector<8x64xf32>
    %c0_80 = arith.constant 0 : index
    %c0_81 = arith.constant 0 : index
    %204 = vector.load %arg14[%c0_80, %c0_81] : memref<1x64xf32, #tpu.memory_space<vmem>>, vector<1x64xf32>
    %205 = vector.broadcast %204 : vector<1x64xf32> to vector<8x64xf32>
    %206 = arith.addf %203, %205 : vector<8x64xf32>
    %207 = arith.negf %206 : vector<8x64xf32>
    %208 = math.exp %207 : vector<8x64xf32>
    %cst_82 = arith.constant 1.000000e+00 : f32
    %209 = vector.broadcast %cst_82 : f32 to vector<8x64xf32>
    %210 = arith.addf %209, %208 : vector<8x64xf32>
    %211 = arith.divf %209, %210 : vector<8x64xf32>
    %212 = arith.mulf %206, %211 : vector<8x64xf32>
    %213 = arith.truncf %212 : vector<8x64xf32> to vector<8x64xbf16>
    %c0_83 = arith.constant 0 : index
    %c0_84 = arith.constant 0 : index
    %214 = vector.load %arg15[%c0_83, %c0_84] : memref<64x32xbf16, #tpu.memory_space<vmem>>, vector<64x32xbf16>
    %cst_85 = arith.constant dense<0.000000e+00> : vector<8x32xf32>
    %215 = tpu.matmul %213, %214, %cst_85 {dimension_numbers = #tpu.dot_dimension_numbers<[1], [0], [0], [1], [0, 0, 1, 1], [], []>} : vector<8x64xbf16>, vector<64x32xbf16>, vector<8x32xf32> -> vector<8x32xf32>
    %c0_86 = arith.constant 0 : index
    %c0_87 = arith.constant 0 : index
    %216 = vector.load %arg16[%c0_86, %c0_87] : memref<1x32xf32, #tpu.memory_space<vmem>>, vector<1x32xf32>
    %217 = vector.broadcast %216 : vector<1x32xf32> to vector<8x32xf32>
    %218 = arith.addf %215, %217 : vector<8x32xf32>
    %219 = arith.addf %176, %218 : vector<8x32xf32>
    %c0_88 = arith.constant 0 : index
    %c0_89 = arith.constant 0 : index
    %c0_90 = arith.constant 0 : index
    %220 = vector.load %arg17[%c0_88, %c0_89, %c0_90] : memref<1x8x32xf32, #tpu.memory_space<vmem>>, vector<1x8x32xf32>
    %221 = vector.shape_cast %220 : vector<1x8x32xf32> to vector<8x32xf32>
    %222 = vector.shape_cast %219 : vector<8x32xf32> to vector<1x8x32xf32>
    tpu.vector_store %arg17[%c0_88, %c0_89, %c0_90], %222 {strides = array<i32>} : memref<1x8x32xf32, #tpu.memory_space<vmem>>, vector<1x8x32xf32>,
    return
  }
  func.func @transform_0(%arg0: i32) -> (i32, i32, i32) {
    %c0_i32 = arith.constant 0 : i32
    %c0_i32_0 = arith.constant 0 : i32
    %c0_i32_1 = arith.constant 0 : i32
    return %arg0, %c0_i32, %c0_i32_0 : i32, i32, i32
  }
  func.func @transform_1(%arg0: i32) -> (i32, i32, i32, i32) {
    %c0_i32 = arith.constant 0 : i32
    %c0_i32_0 = arith.constant 0 : i32
    %c0_i32_1 = arith.constant 0 : i32
    %c0_i32_2 = arith.constant 0 : i32
    return %arg0, %c0_i32, %c0_i32_0, %c0_i32_1 : i32, i32, i32, i32
  }
  func.func @transform_2(%arg0: i32) -> (i32, i32) {
    %c0_i32 = arith.constant 0 : i32
    %c0_i32_0 = arith.constant 0 : i32
    %c0_i32_1 = arith.constant 0 : i32
    return %c0_i32, %c0_i32_0 : i32, i32
  }
  func.func @transform_3(%arg0: i32) -> (i32, i32) {
    %c0_i32 = arith.constant 0 : i32
    %c0_i32_0 = arith.constant 0 : i32
    %c0_i32_1 = arith.constant 0 : i32
    return %c0_i32, %c0_i32_0 : i32, i32
  }
  func.func @transform_4(%arg0: i32) -> (i32, i32) {
    %c0_i32 = arith.constant 0 : i32
    %c0_i32_0 = arith.constant 0 : i32
    %c0_i32_1 = arith.constant 0 : i32
    return %c0_i32, %c0_i32_0 : i32, i32
  }
  func.func @transform_5(%arg0: i32) -> (i32, i32) {
    %c0_i32 = arith.constant 0 : i32
    %c0_i32_0 = arith.constant 0 : i32
    %c0_i32_1 = arith.constant 0 : i32
    return %c0_i32, %c0_i32_0 : i32, i32
  }
  func.func @transform_6(%arg0: i32) -> (i32, i32, i32) {
    %c0_i32 = arith.constant 0 : i32
    %c0_i32_0 = arith.constant 0 : i32
    %c0_i32_1 = arith.constant 0 : i32
    %c0_i32_2 = arith.constant 0 : i32
    return %c0_i32, %c0_i32_0, %c0_i32_1 : i32, i32, i32
  }
  func.func @transform_7(%arg0: i32) -> (i32, i32) {
    %c0_i32 = arith.constant 0 : i32
    %c0_i32_0 = arith.constant 0 : i32
    %c0_i32_1 = arith.constant 0 : i32
    return %c0_i32, %c0_i32_0 : i32, i32
  }
  func.func @transform_8(%arg0: i32) -> (i32, i32) {
    %c0_i32 = arith.constant 0 : i32
    %c0_i32_0 = arith.constant 0 : i32
    %c0_i32_1 = arith.constant 0 : i32
    return %c0_i32, %c0_i32_0 : i32, i32
  }
  func.func @transform_9(%arg0: i32) -> (i32, i32) {
    %c0_i32 = arith.constant 0 : i32
    %c0_i32_0 = arith.constant 0 : i32
    %c0_i32_1 = arith.constant 0 : i32
    return %c0_i32, %c0_i32_0 : i32, i32
  }
  func.func @transform_10(%arg0: i32) -> (i32, i32) {
    %c0_i32 = arith.constant 0 : i32
    %c0_i32_0 = arith.constant 0 : i32
    %c0_i32_1 = arith.constant 0 : i32
    return %c0_i32, %c0_i32_0 : i32, i32
  }
  func.func @transform_11(%arg0: i32) -> (i32, i32) {
    %c0_i32 = arith.constant 0 : i32
    %c0_i32_0 = arith.constant 0 : i32
    %c0_i32_1 = arith.constant 0 : i32
    return %c0_i32, %c0_i32_0 : i32, i32
  }
  func.func @transform_12(%arg0: i32) -> (i32, i32) {
    %c0_i32 = arith.constant 0 : i32
    %c0_i32_0 = arith.constant 0 : i32
    %c0_i32_1 = arith.constant 0 : i32
    return %c0_i32, %c0_i32_0 : i32, i32
  }
  func.func @transform_13(%arg0: i32) -> (i32, i32) {
    %c0_i32 = arith.constant 0 : i32
    %c0_i32_0 = arith.constant 0 : i32
    %c0_i32_1 = arith.constant 0 : i32
    return %c0_i32, %c0_i32_0 : i32, i32
  }
  func.func @transform_14(%arg0: i32) -> (i32, i32) {
    %c0_i32 = arith.constant 0 : i32
    %c0_i32_0 = arith.constant 0 : i32
    %c0_i32_1 = arith.constant 0 : i32
    return %c0_i32, %c0_i32_0 : i32, i32
  }
  func.func @transform_15(%arg0: i32) -> (i32, i32) {
    %c0_i32 = arith.constant 0 : i32
    %c0_i32_0 = arith.constant 0 : i32
    %c0_i32_1 = arith.constant 0 : i32
    return %c0_i32, %c0_i32_0 : i32, i32
  }
  func.func @transform_16(%arg0: i32) -> (i32, i32, i32) {
    %c0_i32 = arith.constant 0 : i32
    %c0_i32_0 = arith.constant 0 : i32
    %c0_i32_1 = arith.constant 0 : i32
    return %arg0, %c0_i32, %c0_i32_0 : i32, i32, i32
  }
}

</mosaic_0001>

<bundles_post_ra>
// kernel: tpu_custom_call.1
= control target key start
LH: loop header
LB: loop body
LE: loop exit
PB: predicated region body
PF: predicated region fallthrough
CT: control target
= control target key end

     0   :  { %s2262_s0 = inlined_call_operand.vmem [shape: f32[2,8,32], index: 0, kind: input, shape index: {}]   ;;  %s2263_s1 = inlined_call_operand.vmem [shape: f32[2,4,8,8], index: 1, kind: input, shape index: {}]   ;;  %s2264_s2 = inlined_call_operand.vmem [shape: f32[1,32], index: 2, kind: input, shape index: {}]   ;;  %s2265_s3 = inlined_call_operand.vmem [shape: f32[1,32], index: 3, kind: input, shape index: {}]   ;;  %s2266_s4 = inlined_call_operand.vmem [shape: bf16[96,32], index: 4, kind: input, shape index: {}]   ;;  %s2267_s5 = inlined_call_operand.vmem [shape: f32[96,1], index: 5, kind: input, shape index: {}]   ;;  %s2268_s6 = inlined_call_operand.vmem [shape: bf16[4,8,32], index: 6, kind: input, shape index: {}]   ;;  %s2269_s7 = inlined_call_operand.vmem [shape: f32[1,32], index: 7, kind: input, shape index: {}]   ;;  %s2270_s8 = inlined_call_operand.vmem [shape: f32[4,4], index: 8, kind: input, shape index: {}]   ;;  %s2271_s9 = inlined_call_operand.vmem [shape: f32[1,4], index: 9, kind: input, shape index: {}]   ;;  %s2272_s10 = inlined_call_operand.vmem [shape: f32[1,32], index: 10, kind: input, shape index: {}]   ;;  %s2273_s11 = inlined_call_operand.vmem [shape: f32[1,32], index: 11, kind: input, shape index: {}]   ;;  %s2274_s12 = inlined_call_operand.vmem [shape: bf16[32,64], index: 12, kind: input, shape index: {}]   ;;  %s2275_s13 = inlined_call_operand.vmem [shape: f32[1,64], index: 13, kind: input, shape index: {}]   ;;  %s2276_s14 = inlined_call_operand.vmem [shape: bf16[64,32], index: 14, kind: input, shape index: {}]   ;;  %s2277_s15 = inlined_call_operand.vmem [shape: f32[1,32], index: 15, kind: input, shape index: {}]   ;;  %s2278_s16 = inlined_call_operand.hbm [shape: f32[2,8,32], index: 16, kind: output, shape index: {}]  }
   0x1   :  { %2280 = sst [smem:[#allocation13_spill]] %s2262_s0 }
   0x2   :  { %2281 = sst [smem:[#allocation14_spill]] %s2263_s1 }
   0x3   :  { %2282 = sst [smem:[#allocation15_spill]] %s2264_s2 }
   0x4   :  { %2283 = sst [smem:[#allocation16_spill]] %s2265_s3 }
   0x5   :  { %2284 = sst [smem:[#allocation17_spill]] %s2270_s8 }
   0x6   :  { %21 = vsyncpa [#allocation4], 0 }
   0x7   :  { %22 = vsyncpa [#allocation6], 0 }
   0x8   :  { %23 = vsyncpa [#allocation3], 0 }
   0x9   :  { %25 = vsyncpa [#allocation3 + $0x1], 0  ;;  %s1961_s21 = smov 0   ;;  %s1963_s22 = smov 0  }
   0xa   :  { %s1965_s23 = smov 0   ;;  %s1967_s24 = smov 0  }
   0xb LB: > { %2285 = sst [smem:[#allocation11_spill]] %s1866_s23  ;;  %s1982_s25 = sadd.s32 4294967295, %s1870_s24   ;;  %s1870_s24 = sphi %s1967_s24, %s2298_s24   ;;  %s1866_s23 = sphi %s1965_s23, %s2295_s23   ;;  %s1862_s22 = sphi %s1963_s22, %s2297_s22   ;;  %s1858_s21 = sphi %s1961_s21, %s2296_s21  }
   0xc   : > { %s1554_s26 = sadd.s32 4294967294, %s1870_s24   ;;  %s1986_s27 = sadd.s32 1, %s1870_s24  }
   0xd   : > { %s384_s28 = sadd.s32 1, %s1866_s23  ;;  %s381_s29 = ssub.s32 %s1870_s24, %s1986_s27 }
   0xe   : > { %p394_p0 = scmp.ne.s32.totalorder %s1866_s23, %s1862_s22  ;;  %p382_p1 = scmp.eq.s32.totalorder %s381_s29, 0 }
   0xf   : > { %p395_p2 = scmp.eq.s32.totalorder %s1982_s25, 1  ;;  %p400_p3 = scmp.ne.s32.totalorder %s1862_s22, %s1858_s21 }
  0x10   : > { %p401_p4 = scmp.eq.s32.totalorder %s1554_s26, 1  ;;  %p1555_p7 = scmp.ge.s32.totalorder %s1870_s24, 1 }
  0x11   : > { %s1997_s30 = scalar_select %p382_p1, %s1866_s23, %s384_s28  }
  0x12   : > { %p1999_p5 = por %p395_p2, %p394_p0  ;;  %p2003_p6 = por %p401_p4, %p400_p3 }
  0x13   : > { %2286 = sst [smem:[#allocation12_spill]] %s1997_s30  ;;  %p408_p8 = scmp.lt.s32.totalorder %s1870_s24, 3 }
  0x14   : > { %p1692_p9 = scmp.eq.s32.totalorder %s1982_s25, 0  ;;  %s2289_s8 = sld [smem:[#allocation17_spill]] }
  0x15   : > { %p409_p10 = pnand %p1555_p7, %p408_p8  ;;  %s448_s29 = sshll.u32 %s2271_s9, 4  ;;  %s449_s29 = int_to_ptr.vmem [resolvable:$true] %s448_s29 }
  0x16   : > { %s1872_s30 = smov [#allocation2]   ;;  %s1873_s23 = smov [#allocation5]  }
  0x17   : > { %p1681_p11 = pneg %p409_p10 }
  0x18   : > { %494 = sbr.rel (%p409_p10) target bundleno = 1870 (0x74e), region = 84 }
  0x19   : > { %p1682_p12 = pnand %p1692_p9, %p1681_p11 }
  0x1a   : > { %s438_s20 = sshll.u32 %s2289_s8, 4  ;;  %s439_s20 = int_to_ptr.vmem [resolvable:$true] %s438_s20 }
  0x1b   : > { %1684 = dma.vmem_to_smem (!%p1682_p12), %s439_s20, 64, %s1872_s30, [#allocation4]  }
  0x1c   : > { %1687 = dma.vmem_to_smem (!%p1682_p12), %s449_s29, 16, %s1873_s23, [#allocation6]  }
  0x1d   : > { %1845 = dma.done.wait (%p1692_p9), [#allocation4], 64  }
  0x1e   : > { %1847 = vsyncadd (%p1692_p9), [#allocation4], 4294967232 }
  0x1f   : > { %1849 = dma.done.wait (%p1692_p9), [#allocation6], 16  }
  0x20   : > { %1851 = vsyncadd (%p1692_p9), [#allocation6], 4294967280 }
  0x21   : > { %506 = sfence }
  0x22   : > { %p555_p13 = scmp.lt.s32.totalorder %s1982_s25, 1  ;;  %vm568_vm0 = vcmask 261120   ;;  %s2290_s20 = sld [smem:[#allocation13_spill]]  ;;  %v1874_v2 = vmov 32.0   ;;  %v619_v14 = vld [vmem:[%s2267_s5] sm:$0xff]  ;;  %v1875_v15 = vmov 0  }
  0x23   : > { %1744 = vrcp.f32 %v1874_v2  ;;  %1734 = vset.pattern.permute.xlu1 %v1875_v15  ;;  %1736 = vset.pattern.permute.xlu0 %v1875_v15  ;;  %v620_v17 = vld [vmem:[%s2267_s5 + $0x8] sm:$0xff]  ;;  %v626_v24 = vld [vmem:[%s2267_s5 + $0x38] sm:$0xff]  ;;  %s2291_s2 = sld [smem:[#allocation15_spill]]  ;;  %v1658_v36 = vld [vmem:[%s2266_s4] sm:$0xff]  ;;  %vm1005_vm5 = vcmask 1043456   ;;  %vm1001_vm6 = vcmask 64512  }
  0x24   : > { %s2028_s30 = scalar_select %p555_p13, %s1982_s25, 1  ;;  %633 = vperm.xlu1 %1734, %v619_v14   ;;  %1735 = vset.pattern.permute.xlu2 %v1875_v15  ;;  %v624_v20 = vld [vmem:[%s2267_s5 + $0x28] sm:$0xff]  ;;  %v622_v37 = vld [vmem:[%s2267_s5 + $0x18] sm:$0xff]  ;;  %v621_v38 = vld [vmem:[%s2267_s5 + $0x10] sm:$0xff]  ;;  %vm1426_vm14 = vcmask 523264  }
  0x25   : > { %s2292_s3 = sld [smem:[#allocation16_spill]]  ;;  %643 = vperm.xlu2 %1735, %v621_v38   ;;  %v1659_v39 = vld [vmem:[%s2266_s4 + $0x8] sm:$0xff]  ;;  %v623_v40 = vld [vmem:[%s2267_s5 + $0x20] sm:$0xff]  ;;  %v625_v41 = vld [vmem:[%s2267_s5 + $0x30] sm:$0xff] }
  0x26   : > { %s1563_s23 = sshll.u32 %s2028_s30, 3  ;;  %v1660_v42 = vld [vmem:[%s2266_s4 + $0x10] sm:$0xff]  ;;  %v1661_v43 = vld [vmem:[%s2266_s4 + $0x18] sm:$0xff]  ;;  %v1663_v14 = vld [vmem:[%s2266_s4 + $0x28] sm:$0xff]  ;;  %s929_s28 = sld [smem:[#allocation2]] }
  0x27   : > { %s1596_s29 = sld [smem:[#allocation2 + $0x80]] }
  0x28   : > { %s558_s26 = scalar_lea.vmem %s2290_s20, %s1563_s23  ;;  %s1657_s23 = sshll.u32 %s2028_s30, 5 }
  0x29   : > { %v2034_v0 = vld [vmem:[%s558_s26] sm:$0xff]  ;;  %v1745_v3 = vpop.eup %1744  ;;  %s2293_s1 = sld [smem:[#allocation14_spill]] }
  0x2a   : > { %v569_v1 = vsel %vm568_vm0, %v2034_v0, 0.0  ;;  %v573_v4 = vmul.f32 32.0, %v1745_v3  ;;  %vm577_vm1 = vweird.f32 %v1745_v3  ;;  %v1737_v28 = vld [vmem:[%s2291_s2] ss:$0 sm:$0xff]  ;;  %s1597_s2 = sld [smem:[#allocation2 + $0x100]] }
  0x2b   : > { %570 = vadd.xlane.f32.xlu0 %v569_v1  ;;  %v1738_v31 = vld [vmem:[%s2292_s3] ss:$0 sm:$0xff]  ;;  %s1598_s8 = sld [smem:[#allocation2 + $0x180]] }
  0x2c   : > { %v574_v5 = vsub.f32 1.0, %v573_v4  ;;  %638 = vperm.xlu1 %1734, %v620_v17   ;;  %s944_s30 = sld [smem:[#allocation5]] }
  0x2d   : > { %653 = vperm.xlu2 %1735, %v623_v40   ;;  %s1609_s20 = sld [smem:[#allocation2 + $0x3]] }
  0x2e   : > { %v575_v6 = vmul.f32 %v1745_v3, %v574_v5  ;;  %s1610_s26 = sld [smem:[#allocation2 + $0x83]] }
  0x2f   : > { %s563_s19 = scalar_lea.vmem %s2293_s1, %s1657_s23  ;;  %s1611_s23 = sld [smem:[#allocation2 + $0x103]] }
  0x30   : > { %v576_v7 = vadd.f32 %v1745_v3, %v575_v6  ;;  %v2111_v38 = vld [vmem:[%s563_s19 + $0x18] sm:$0xff]  ;;  %s1601_s18 = sld [smem:[#allocation2 + $0x101]] }
  0x31   : > { %s2118_s3 = sld [smem:[#allocation2 + $0x181]] }
  0x32   : > { %v2038_v8 = vsel %vm577_vm1, %v1745_v3, %v576_v7 }
  0x34   : > { %658 = vperm.xlu1 %1734, %v624_v20  }
  0x35   : > { %663 = vperm.xlu2 %1735, %v625_v41  }
  0x3c   : > { %668 = vperm.xlu1 %1734, %v626_v24  }
  0x7f   : > { %v644_v50 = vpop.permute.xlu2 %643 }
  0x87   : > { %v654_v56 = vpop.permute.xlu2 %653 }
  0x8f   : > { %v664_v3 = vpop.permute.xlu2 %663 }
  0x96   : > { %v634_v44 = vpop.permute.xlu1 %633 }
  0x9e   : > { %v571_v9 = vpop.xlane.xlu0 %570  ;;  %v639_v47 = vpop.permute.xlu1 %638 }
  0x9f   : > { %v579_v10 = vmul.f32 %v2038_v8, %v571_v9 }
  0xa1   : > { %v580_v11 = vsub.f32 %v2034_v0, %v579_v10 }
  0xa3   : > { %v581_v12 = vmul.f32 %v580_v11, %v580_v11 }
  0xa5   : > { %v582_v13 = vsel %vm568_vm0, %v581_v12, 0.0 }
  0xa6   : > { %583 = vadd.xlane.f32.xlu0 %v582_v13  ;;  %v659_v61 = vpop.permute.xlu1 %658 }
  0xae   : > { %v669_v9 = vpop.permute.xlu1 %668 }
  0xba   : > { %648 = vperm.xlu0 %1736, %v622_v37  }
 0x119   : > { %v584_v16 = vpop.xlane.xlu0 %583 }
 0x11a   : > { %v585_v18 = vmul.f32 %v584_v16, %v2038_v8 }
 0x11c   : > { %v586_v19 = vadd.f32 1e-05, %v585_v18 }
 0x11e   : > { %1746 = vrsqrt.f32 %v586_v19  ;;  %vm593_vm3 = vweird.f32 %v586_v19 }
 0x124   : > { %v1747_v21 = vpop.eup %1746 }
 0x125   : > { %v588_v22 = vmul.f32 %v1747_v21, %v586_v19  ;;  %vm594_vm2 = vweird.f32 %v1747_v21 }
 0x126   : > { %vm595_vm4 = vmor %vm593_vm3, %vm594_vm2 }
 0x127   : > { %v589_v23 = vmul.f32 %v1747_v21, %v588_v22 }
 0x129   : > { %v590_v25 = vmul.f32 0.5, %v589_v23 }
 0x12b   : > { %v591_v26 = vsub.f32 1.5, %v590_v25 }
 0x12c   : > { %v649_v53 = vpop.permute.xlu0 %648 }
 0x12d   : > { %v592_v27 = vmul.f32 %v1747_v21, %v591_v26 }
 0x12f   : > { %v596_v29 = vsel %vm595_vm4, %v1747_v21, %v592_v27  ;;  %v1662_v27 = vld [vmem:[%s2266_s4 + $0x20] sm:$0xff] }
 0x130   : > { %v597_v30 = vmul.f32 %v596_v29, %v580_v11  ;;  %v926_v29 = vld [vmem:[%s563_s19 + $0x8] sm:$0xff] }
 0x132   : > { %v601_v32 = vmul.f32 %v1737_v28, %v597_v30  ;;  %v925_v28 = vld [vmem:[%s563_s19] sm:$0xff]  ;;  %v930_v30 = vstv %s929_s28  ;;  %s1599_s28 = sld [smem:[#allocation2 + $0x1]] }
 0x134   : > { %v605_v33 = vadd.f32 %v1738_v31, %v601_v32  ;;  %v933_v31 = vstv %s1596_s29  ;;  %v931_v32 = vmul.f32 %v930_v30, %v925_v28  ;;  %s1600_s29 = sld [smem:[#allocation2 + $0x81]] }
 0x136   : > { %v606_v34 = vpack.c.bf16 %v605_v33, %v605_v33  ;;  %v934_v33 = vmul.f32 %v933_v31, %v926_v29 }
 0x138   : > { %v740_v35 = vsel %vm568_vm0, %v606_v34, 0  ;;  %v927_v34 = vld [vmem:[%s563_s19 + $0x10] sm:$0xff]  ;;  %s1605_s19 = sld [smem:[#allocation2 + $0x82]] }
 0x139   : > { %749 = vmatpush.bf16.xpose.msra.mxu0 %v740_v35  ;;  %1670 = vmatpush.bf16.xpose.msra.mxu3 %v740_v35  ;;  %v937_v35 = vstv %s1597_s2  ;;  %s2114_s2 = sld [smem:[#allocation2 + $0x183]] }
 0x13a   : > { %v938_v37 = vmul.f32 %v937_v35, %v927_v34 }
 0x140   : > { %1590 = vmatmul.msk.bf16.vlgmr.msra.gmra.mxu0 %vm568_vm0, %v1658_v36  ;;  %1595 = vmatmul.msk.bf16.vlgmr.msra.gmra.mxu3 %vm568_vm0, %v1663_v14  ;;  %v935_v36 = vadd.f32 %v934_v33, %v931_v32 }
 0x142   : > { %v939_v40 = vadd.f32 %v938_v37, %v935_v36 }
 0x150   : > { %1591 = vmatmul.msk.bf16.gmra.mxu0 %vm568_vm0, %v1659_v39  ;;  %v941_v39 = vstv %s1598_s8  ;;  %s1604_s8 = sld [smem:[#allocation2 + $0x2]] }
 0x151   : > { %v942_v41 = vmul.f32 %v941_v39, %v2111_v38 }
 0x160   : > { %1592 = vmatmul.msk.bf16.gmra.mxu0 %vm568_vm0, %v1660_v42  ;;  %v943_v42 = vadd.f32 %v942_v41, %v939_v40 }
 0x170   : > { %1593 = vmatmul.msk.bf16.gmra.mxu0 %vm568_vm0, %v1661_v43  ;;  %v945_v43 = vstv %s944_s30  ;;  %s1606_s30 = sld [smem:[#allocation2 + $0x102]] }
 0x180   : > { %1594 = vmatmul.msk.bf16.gmra.mxu0 %vm568_vm0, %v1662_v27 }
 0x1bd   : > { %v751_v45 = vpop.f32.mrf.mxu0 }
 0x1be   : > { %v752_v46 = vadd.f32 %v751_v45, %v634_v44  ;;  %v946_v44 = vadd.f32 %v945_v43, %v943_v42  ;;  %v629_v42 = vld [vmem:[%s2267_s5 + $0x50] sm:$0xff] }
 0x1c0   : > { %781 = vxpose.xlu2.b32.start.end [1/1] (short) (narrow) %v752_v46, 8 }
 0x1c5   : > { %v753_v48 = vpop.f32.mrf.mxu0 }
 0x1c6   : > { %v754_v49 = vadd.f32 %v753_v48, %v639_v47  ;;  %v984_v47 = vstv %s1609_s20  ;;  %v987_v48 = vstv %s1610_s26  ;;  %s1613_s20 = sld [smem:[#allocation5 + $0x3]] }
 0x1c7   : > { %s1603_s26 = sld [smem:[#allocation5 + $0x1]] }
 0x1c8   : > { %813 = vxpose.xlu1.b32.start.end [1/1] (short) (narrow) %v754_v49, 8 }
 0x1cc   : > { %v999_v14 = vstv %s1613_s20 }
 0x1cd   : > { %v756_v51 = vpop.f32.mrf.mxu0 }
 0x1ce   : > { %v757_v52 = vadd.f32 %v756_v51, %v644_v50  ;;  %v948_v50 = vstv %s1599_s28  ;;  %v951_v51 = vstv %s1600_s29  ;;  %s1607_s28 = sld [smem:[#allocation2 + $0x182]] }
 0x1cf   : > { %s1608_s29 = sld [smem:[#allocation5 + $0x2]] }
 0x1d0   : > { %845 = vxpose.xlu0.b32.start.end [1/1] (short) (narrow) %v757_v52, 8  ;;  %v985_v52 = vmul.f32 %v984_v47, %v925_v28 }
 0x1d5   : > { %v758_v54 = vpop.f32.mrf.mxu0  ;;  %v981_v32 = vstv %s1608_s29 }
 0x1d6   : > { %v759_v55 = vadd.f32 %v758_v54, %v649_v53  ;;  %v988_v53 = vmul.f32 %v987_v48, %v926_v29  ;;  %v991_v54 = vstv %s1611_s23 }
 0x1d8   : > { %877 = vxpose.xlu2.b32.start.end [1/1] (short) (narrow) %v759_v55, 8  ;;  %v949_v55 = vmul.f32 %v948_v50, %v925_v28 }
 0x1dd   : > { %v761_v57 = vpop.f32.mrf.mxu0 }
 0x1de   : > { %v762_v58 = vadd.f32 %v761_v57, %v654_v56  ;;  %v952_v56 = vmul.f32 %v951_v51, %v926_v29  ;;  %v955_v57 = vstv %s1601_s18 }
 0x1e0   : > { %v917_v59 = vpack.c.bf16 %v762_v58, %v762_v58 }
 0x1e2   : > { %v1007_v60 = vsel %vm1005_vm5, %v917_v59, 0  ;;  %v989_v59 = vadd.f32 %v988_v53, %v985_v52 }
 0x1e3   : > { %1016 = vmatpush.bf16.msra.mxu1 %v1007_v60  ;;  %v992_v60 = vmul.f32 %v991_v54, %v927_v34 }
 0x1e5   : > { %v763_v62 = vpop.f32.mrf.mxu0 }
 0x1e6   : > { %v764_v63 = vadd.f32 %v763_v62, %v659_v61  ;;  %v995_v61 = vstv %s2114_s2  ;;  %v953_v62 = vadd.f32 %v952_v56, %v949_v55 }
 0x1e8   : > { %v918_v1 = vpack.c.bf16 %v764_v63, %v764_v63  ;;  %v956_v63 = vmul.f32 %v955_v57, %v927_v34 }
 0x1ea   : > { %v1026_v2 = vsel %vm1005_vm5, %v918_v1, 0  ;;  %v959_v1 = vstv %s2118_s3  ;;  %s552_s3 = sand.u32 1, %s1862_s22  }
 0x1eb   : > { %1035 = vmatpush.bf16.msra.mxu2 %v1026_v2  ;;  %v966_v2 = vstv %s1604_s8  ;;  %s1562_s8 = sshll.u32 %s552_s3, 3 }
 0x1ec   : > { %s554_s23 = scalar_lea.vmem [#allocation7], %s1562_s8  ;;  %s1820_s8 = scalar_lea.hbm %s2278_s16, 16 }
 0x1ed   : > { %v766_v4 = vpop.f32.mrf.mxu0  ;;  %s1458_s18 = sshll.u32 %s554_s23, 4  ;;  %s1459_s18 = int_to_ptr.vmem [resolvable:$true] %s1458_s18 }
 0x1ee   : > { %v767_v5 = vadd.f32 %v766_v4, %v664_v3  ;;  %v969_v3 = vstv %s1605_s19  ;;  %v2124_v4 = vpop.f32.mrf.mxu3  ;;  %s1654_s19 = sshll.u32 %s1982_s25, 3  ;;  %s1446_s25 = scalar_lea.sflag [#allocation3], %s552_s3 }
 0x1ef   : > { %s1456_s29 = scalar_lea.hbm %s2278_s16, %s1654_s19 }
 0x1f0   : > { %v919_v6 = vpack.c.bf16 %v767_v5, %v767_v5  ;;  %v993_v5 = vadd.f32 %v992_v60, %v989_v59  ;;  %s1460_s2 = sshll.u32 %s1456_s29, 4  ;;  %s1461_s2 = int_to_ptr.hbm [resolvable:$true] %s1460_s2 }
 0x1f1   : > { %s1814_s1 = sshra.s32 %s1461_s2, 4  ;;  %s1815_s1 = int_to_ptr.hbm [resolvable:$true] %s1814_s1 }
 0x1f2   : > { %v1045_v7 = vsel %vm1005_vm5, %v919_v6, 0  ;;  %v996_v6 = vmul.f32 %v995_v61, %v2111_v38  ;;  %p1821_p3 = scmp.lt.s32.totalorder %s1815_s1, %s2278_s16 }
 0x1f3   : > { %1054 = vmatpush.bf16.msrb.mxu3 %v1045_v7  ;;  %v957_v7 = vadd.f32 %v956_v63, %v953_v62 }
 0x1f5   : > { %v768_v10 = vpop.f32.mrf.mxu0 }
 0x1f6   : > { %v769_v11 = vadd.f32 %v768_v10, %v669_v9  ;;  %v960_v9 = vmul.f32 %v959_v1, %v2111_v38  ;;  %v967_v10 = vmul.f32 %v966_v2, %v925_v28  ;;  %v627_v28 = vld [vmem:[%s2267_s5 + $0x40] sm:$0xff] }
 0x1f8   : > { %v920_v12 = vpack.c.bf16 %v769_v11, %v769_v11  ;;  %v970_v11 = vmul.f32 %v969_v3, %v926_v29 }
 0x1fa   : > { %v1064_v13 = vsel %vm1005_vm5, %v920_v12, 0  ;;  %v973_v12 = vstv %s1606_s30  ;;  %s1816_s30 = scalar_lea.hbm %s1815_s1, 8 }
 0x1fb   : > { %1073 = vmatpush.bf16.msrb.mxu1 %v1064_v13  ;;  %v997_v13 = vadd.f32 %v996_v6, %v993_v5  ;;  %p1817_p0 = scmp.ne.s32.totalorder %s1815_s1, %s1816_s30  ;;  %p1822_p4 = scmp.lt.s32.totalorder %s1820_s8, %s1816_s30 }
 0x1fd   : > { %v771_v47 = vpop.f32.mrf.mxu0  ;;  %p1818_p1 = pnand %p1817_p0, %p1999_p5  ;;  %p1823_p7 = por %p1822_p4, %p1821_p3 }
 0x1ff   : > { %p1819_p2 = pneg %p1818_p1 }
 0x201   : > { %p1824_p8 = pnand %p1823_p7, %p1819_p2 }
 0x205   : > { %v773_v54 = vpop.f32.mrf.mxu0 }
 0x259   : > { %v797_v15 = vpop.trf.xlu2 }
 0x25a   : > { %v909_v16 = vmul.f32 0.35355338, %v797_v15  ;;  %v961_v15 = vadd.f32 %v960_v9, %v957_v7  ;;  %v630_v7 = vld [vmem:[%s2267_s5 + $0x58] sm:$0xff] }
 0x25c   : > { %v913_v17 = vpack.c.bf16 %v909_v16, %v909_v16  ;;  %v971_v16 = vadd.f32 %v970_v11, %v967_v10 }
 0x25e   : > { %1614 = vmatmul.msk.bf16.vlgmr.msra.gmra.mxu1 %vm1001_vm6, %v913_v17  ;;  %v974_v17 = vmul.f32 %v973_v12, %v927_v34 }
 0x26c   : > { %v829_v18 = vpop.trf.xlu1 }
 0x26d   : > { %v910_v19 = vmul.f32 0.35355338, %v829_v18  ;;  %v963_v18 = vstv %s1603_s26 }
 0x26f   : > { %v914_v20 = vpack.c.bf16 %v910_v19, %v910_v19  ;;  %v977_v19 = vstv %s1607_s28 }
 0x271   : > { %1615 = vmatmul.msk.bf16.vlgmr.msra.gmra.mxu2 %vm1001_vm6, %v914_v20  ;;  %v893_v21 = vpop.trf.xlu2  ;;  %v1000_v20 = vadd.f32 %v999_v14, %v997_v13 }
 0x272   : > { %v912_v22 = vmul.f32 0.35355338, %v893_v21  ;;  %v964_v21 = vadd.f32 %v963_v18, %v961_v15 }
 0x274   : > { %v916_v23 = vpack.c.bf16 %v912_v22, %v912_v22  ;;  %v861_v24 = vpop.trf.xlu0  ;;  %v975_v22 = vadd.f32 %v974_v17, %v971_v16 }
 0x275   : > { %v911_v25 = vmul.f32 0.35355338, %v861_v24  ;;  %v2129_v24 = vpop.f32.mrf.mxu3 }
 0x276   : > { %1617 = vmatmul.msk.bf16.vlgmr.msrb.gmra.mxu1 %vm1001_vm6, %v916_v23  ;;  %v978_v23 = vmul.f32 %v977_v19, %v2111_v38  ;;  %v628_v38 = vld [vmem:[%s2267_s5 + $0x48] sm:$0xff] }
 0x277   : > { %v915_v26 = vpack.c.bf16 %v911_v25, %v911_v25 }
 0x278   : > { %v979_v30 = vadd.f32 %v978_v23, %v975_v22 }
 0x279   : > { %1616 = vmatmul.msk.bf16.vlgmr.msrb.gmra.mxu3 %vm1001_vm6, %v915_v26 }
 0x27a   : > { %v982_v34 = vadd.f32 %v981_v32, %v979_v30 }
 0x2db   : > { %v1018_v45 = vpop.f32.mrf.mxu1 }
 0x2dc   : > { %v2116_v46 = vadd.f32 %v1018_v45, %v946_v44 }
 0x2de   : > { %v1079_v49 = vsel %vm1001_vm6, %v2116_v46, -inf }
 0x2df   : > { %1080 = vmax.xlane.f32.xlu2 %v1079_v49 }
 0x2e3   : > { %v1020_v58 = vpop.f32.mrf.mxu1 }
 0x2f3   : > { %v1075_v25 = vpop.f32.mrf.mxu1 }
 0x2f4   : > { %v1076_v26 = vadd.f32 %v1075_v25, %v1000_v20  ;;  %v1037_v27 = vpop.f32.mrf.mxu2 }
 0x2f5   : > { %v1038_v29 = vadd.f32 %v1037_v27, %v964_v21 }
 0x2f6   : > { %v1088_v31 = vsel %vm1001_vm6, %v1076_v26, -inf }
 0x2f7   : > { %673 = vperm.xlu2 %1735, %v627_v28   ;;  %1089 = vmax.xlane.f32.xlu1 %v1088_v31  ;;  %v1082_v33 = vsel %vm1001_vm6, %v1038_v29, -inf }
 0x2f8   : > { %1083 = vmax.xlane.f32.xlu0 %v1082_v33 }
 0x2fb   : > { %v1077_v35 = vpop.f32.mrf.mxu1 }
 0x2fc   : > { %v1039_v36 = vpop.f32.mrf.mxu2  ;;  %v1056_v37 = vpop.f32.mrf.mxu3 }
 0x2fd   : > { %v1057_v39 = vadd.f32 %v1056_v37, %v982_v34  ;;  %v1207_v36 = vld [vmem:[%s2268_s6] sm:$0xf] }
 0x2fe   : > { %v1215_v37 = vsel %vm1005_vm5, %v1207_v36, 0  ;;  %v1667_v36 = vld [vmem:[%s2276_s14 + $0x8] sm:$0xff] }
 0x2ff   : > { %678 = vperm.xlu2 %1735, %v628_v38   ;;  %v1085_v40 = vsel %vm1001_vm6, %v1057_v39, -inf  ;;  %v1209_v38 = vld [vmem:[%s2268_s6 + $0x8] sm:$0xf] }
 0x300   : > { %1086 = vmax.xlane.f32.xlu1 %v1085_v40  ;;  %v1253_v40 = vsel %vm1005_vm5, %v1209_v38, 0  ;;  %v1666_v38 = vld [vmem:[%s2276_s14] sm:$0xff] }
 0x304   : > { %v1058_v41 = vpop.f32.mrf.mxu3 }
 0x307   : > { %683 = vperm.xlu2 %1735, %v629_v42   ;;  %v1208_v42 = vld [vmem:[%s2268_s6 + $0x4] sm:$0xf] }
 0x352   : > { %v1081_v43 = vpop.xlane.xlu2 %1080 }
 0x353   : > { %v1091_v44 = vsub.f32 %v2116_v46, %v1081_v43  ;;  %v1234_v43 = vsel %vm1005_vm5, %v1208_v42, 0 }
 0x355   : > { %v1095_v45 = vmul.f32 1.442695, %v1091_v44 }
 0x357   : > { %1748 = vpow2.f32 %v1095_v45 }
 0x35a   : > { %v674_v48 = vpop.permute.xlu2 %673 }
 0x35b   : > { %v772_v49 = vadd.f32 %v771_v47, %v674_v48 }
 0x35d   : > { %v1749_v50 = vpop.eup %1748  ;;  %v921_v51 = vpack.c.bf16 %v772_v49, %v772_v49 }
 0x35e   : > { %v1103_v52 = vsel %vm1001_vm6, %v1749_v50, 0.0 }
 0x35f   : > { %1104 = vadd.xlane.f32.xlu1 %v1103_v52  ;;  %v1131_v53 = vsel %vm1001_vm6, %v921_v51, 0 }
 0x360   : > { %1140 = vmatpush.bf16.xpose.msrb.mxu2 %v1131_v53 }
 0x362   : > { %v679_v55 = vpop.permute.xlu2 %678 }
 0x363   : > { %v774_v56 = vadd.f32 %v773_v54, %v679_v55 }
 0x365   : > { %v922_v57 = vpack.c.bf16 %v774_v56, %v774_v56 }
 0x367   : > { %v1150_v58 = vsel %vm1001_vm6, %v922_v57, 0 }
 0x368   : > { %1159 = vmatpush.bf16.xpose.msra.mxu3 %v1150_v58 }
 0x36a   : > { %v1090_v46 = vpop.xlane.xlu1 %1089  ;;  %v684_v59 = vpop.permute.xlu2 %683 }
 0x36b   : > { %v777_v60 = vadd.f32 %v2124_v4, %v684_v59  ;;  %v1084_v61 = vpop.xlane.xlu0 %1083  ;;  %v1094_v1 = vsub.f32 %v1076_v26, %v1090_v46 }
 0x36c   : > { %v1092_v62 = vsub.f32 %v1038_v29, %v1084_v61 }
 0x36d   : > { %v923_v63 = vpack.c.bf16 %v777_v60, %v777_v60  ;;  %v1101_v5 = vmul.f32 1.442695, %v1094_v1 }
 0x36e   : > { %v1097_v2 = vmul.f32 1.442695, %v1092_v62 }
 0x36f   : > { %v1169_v3 = vsel %vm1001_vm6, %v923_v63, 0 }
 0x370   : > { %1750 = vpow2.f32 %v1097_v2  ;;  %1178 = vmatpush.bf16.xpose.msra.mxu1 %v1169_v3  ;;  %1224 = vmatpush.bf16.msrb.mxu3 %v1215_v37  ;;  %v1742_v37 = vld [vmem:[%s2275_s13] ss:$0 sm:$0xff] }
 0x371   : > { %1752 = vpow2.f32 %v1101_v5  ;;  %v1739_v5 = vld [vmem:[%s2269_s7] ss:$0 sm:$0xff] }
 0x373   : > { %v1087_v6 = vpop.xlane.xlu1 %1086 }
 0x374   : > { %v1093_v10 = vsub.f32 %v1057_v39, %v1087_v6  ;;  %v1210_v39 = vld [vmem:[%s2268_s6 + $0xc] sm:$0xf] }
 0x375   : > { %v1272_v41 = vsel %vm1005_vm5, %v1210_v39, 0 }
 0x376   : > { %v1751_v9 = vpop.eup %1750  ;;  %v1099_v11 = vmul.f32 1.442695, %v1093_v10 }
 0x377   : > { %v1106_v4 = vsel %vm1001_vm6, %v1751_v9, 0.0  ;;  %v1753_v12 = vpop.eup %1752 }
 0x378   : > { %688 = vperm.xlu1 %1734, %v630_v7   ;;  %1107 = vadd.xlane.f32.xlu0 %v1106_v4  ;;  %1754 = vpow2.f32 %v1099_v11  ;;  %v1112_v13 = vsel %vm1001_vm6, %v1753_v12, 0.0 }
 0x379   : > { %1243 = vmatpush.bf16.msrb.mxu1 %v1234_v43 }
 0x37e   : > { %v1755_v14 = vpop.eup %1754 }
 0x37f   : > { %v1109_v15 = vsel %vm1001_vm6, %v1755_v14, 0.0 }
 0x380   : > { %1113 = vadd.xlane.f32.xlu0 %v1112_v13 }
 0x388   : > { %1110 = vadd.xlane.f32.xlu0 %v1109_v15 }
 0x3d2   : > { %v1105_v16 = vpop.xlane.xlu1 %1104 }
 0x3d3   : > { %1756 = vrcp.f32 %v1105_v16 }
 0x3d9   : > { %v1757_v17 = vpop.eup %1756 }
 0x3da   : > { %v1119_v18 = vmul.f32 %v1757_v17, %v1749_v50 }
 0x3dc   : > { %v1123_v19 = vpack.c.bf16 %v1119_v18, %v1119_v18  ;;  %v1665_v18 = vld [vmem:[%s2274_s12 + $0x8] sm:$0xff] }
 0x3de   : > { %1618 = vmatmul.msk.bf16.vlgmr.msrb.gmra.mxu2 %vm1001_vm6, %v1123_v19 }
 0x3ea   : > { %v689_v20 = vpop.permute.xlu1 %688 }
 0x3eb   : > { %v779_v21 = vadd.f32 %v2129_v24, %v689_v20  ;;  %v1108_v22 = vpop.xlane.xlu0 %1107 }
 0x3ec   : > { %1758 = vrcp.f32 %v1108_v22 }
 0x3ed   : > { %v924_v23 = vpack.c.bf16 %v779_v21, %v779_v21 }
 0x3ef   : > { %v1188_v25 = vsel %vm1001_vm6, %v924_v23, 0 }
 0x3f0   : > { %1197 = vmatpush.bf16.xpose.msra.mxu2 %v1188_v25 }
 0x3f2   : > { %v1759_v26 = vpop.eup %1758 }
 0x3f3   : > { %v1120_v27 = vmul.f32 %v1759_v26, %v1751_v9  ;;  %v1114_v28 = vpop.xlane.xlu0 %1113 }
 0x3f4   : > { %1760 = vrcp.f32 %v1114_v28 }
 0x3f5   : > { %v1124_v29 = vpack.c.bf16 %v1120_v27, %v1120_v27 }
 0x3f7   : > { %1619 = vmatmul.msk.bf16.vlgmr.msra.gmra.mxu3 %vm1001_vm6, %v1124_v29  ;;  %v1740_v29 = vld [vmem:[%s2272_s10] ss:$0 sm:$0xff] }
 0x3f8   : > { %1262 = vmatpush.bf16.msrb.mxu2 %v1253_v40  ;;  %1281 = vmatpush.bf16.msra.mxu3 %v1272_v41 }
 0x3fa   : > { %v1761_v30 = vpop.eup %1760 }
 0x3fb   : > { %v1122_v31 = vmul.f32 %v1761_v30, %v1753_v12  ;;  %v1111_v32 = vpop.xlane.xlu0 %1110 }
 0x3fc   : > { %1762 = vrcp.f32 %v1111_v32 }
 0x3fd   : > { %v1126_v33 = vpack.c.bf16 %v1122_v31, %v1122_v31 }
 0x3ff   : > { %1621 = vmatmul.msk.bf16.vlgmr.msra.gmra.mxu2 %vm1001_vm6, %v1126_v33 }
 0x402   : > { %v1763_v24 = vpop.eup %1762 }
 0x403   : > { %v1121_v34 = vmul.f32 %v1763_v24, %v1755_v14 }
 0x405   : > { %v1125_v35 = vpack.c.bf16 %v1121_v34, %v1121_v34  ;;  %v1669_v34 = vld [vmem:[%s2276_s14 + $0x18] sm:$0xff] }
 0x406   : > { %1434 = vmatpush.bf16.msra.mxu2 %v1669_v34 }
 0x407   : > { %1620 = vmatmul.msk.bf16.vlgmr.msra.gmra.mxu1 %vm1001_vm6, %v1125_v35  ;;  %v1668_v35 = vld [vmem:[%s2276_s14 + $0x10] sm:$0xff] }
 0x408   : > { %1362 = vmatpush.bf16.msra.mxu1 %v1665_v18 }
 0x40a   : > { %1435 = vmatpush.bf16.msra.mxu2 %v1668_v35 }
 0x40e   : > { %1436 = vmatpush.bf16.msra.mxu2 %v1667_v36 }
 0x412   : > { %1437 = vmatpush.bf16.msra.mxu2 %v1666_v38 }
 0x461   : > { %v1142_v44 = vpop.f32.mrf.mxu2 }
 0x462   : > { %v1203_v45 = vpack.c.bf16 %v1142_v44, %v1142_v44 }
 0x464   : > { %1622 = vmatmul.msk.bf16.vlgmr.msrb.gmra.mxu3 %vm1001_vm6, %v1203_v45 }
 0x469   : > { %v1144_v47 = vpop.f32.mrf.mxu2 }
 0x47a   : > { %v1161_v48 = vpop.f32.mrf.mxu3 }
 0x47b   : > { %v1204_v49 = vpack.c.bf16 %v1161_v48, %v1161_v48 }
 0x47d   : > { %1623 = vmatmul.msk.bf16.vlgmr.msrb.gmra.mxu1 %vm1001_vm6, %v1204_v49 }
 0x482   : > { %v1163_v50 = vpop.f32.mrf.mxu3  ;;  %v1199_v51 = vpop.f32.mrf.mxu2 }
 0x483   : > { %v1206_v52 = vpack.c.bf16 %v1199_v51, %v1199_v51 }
 0x484   : > { %v1180_v53 = vpop.f32.mrf.mxu1 }
 0x485   : > { %v1205_v54 = vpack.c.bf16 %v1180_v53, %v1180_v53  ;;  %1625 = vmatmul.msk.bf16.vlgmr.msra.gmra.mxu3 %vm1001_vm6, %v1206_v52 }
 0x487   : > { %1624 = vmatmul.msk.bf16.vlgmr.msrb.gmra.mxu2 %vm1001_vm6, %v1205_v54 }
 0x48a   : > { %v1201_v55 = vpop.f32.mrf.mxu2 }
 0x48c   : > { %v1182_v56 = vpop.f32.mrf.mxu1 }
 0x4e7   : > { %v1226_v57 = vpop.f32.mrf.mxu3 }
 0x4e8   : > { %v1287_v62 = vsel %vm568_vm0, %v1226_v57, 0.0 }
 0x4ef   : > { %v1228_v58 = vpop.f32.mrf.mxu3 }
 0x4f0   : > { %v1743_v58 = vld [vmem:[%s2277_s15] ss:$0 sm:$0xff] }
 0x4fa   : > { %v1245_v46 = vpop.f32.mrf.mxu1 }
 0x4fb   : > { %v1288_v60 = vsel %vm568_vm0, %v1245_v46, 0.0 }
 0x4fc   : > { %v1289_v63 = vadd.f32 %v1288_v60, %v1287_v62 }
 0x502   : > { %v1247_v59 = vpop.f32.mrf.mxu1 }
 0x508   : > { %v1283_v61 = vpop.f32.mrf.mxu3 }
 0x509   : > { %v1292_v6 = vsel %vm568_vm0, %v1283_v61, 0.0 }
 0x50a   : > { %v1264_v1 = vpop.f32.mrf.mxu2 }
 0x50b   : > { %v1290_v2 = vsel %vm568_vm0, %v1264_v1, 0.0 }
 0x50c   : > { %v1291_v3 = vadd.f32 %v1290_v2, %v1289_v63 }
 0x50e   : > { %v1293_v7 = vadd.f32 %v1292_v6, %v1291_v3 }
 0x510   : > { %v1298_v9 = vadd.f32 %v1739_v5, %v1293_v7  ;;  %v1285_v10 = vpop.f32.mrf.mxu3 }
 0x512   : > { %v1266_v4 = vpop.f32.mrf.mxu2  ;;  %v2189_v11 = vadd.f32 %v1298_v9, %v2034_v0  ;;  %v1664_v0 = vld [vmem:[%s2274_s12] sm:$0xff] }
 0x513   : > { %1363 = vmatpush.bf16.msra.mxu1 %v1664_v0 }
 0x514   : > { %v1302_v12 = vsel %vm568_vm0, %v2189_v11, 0.0 }
 0x515   : > { %1303 = vadd.xlane.f32.xlu1 %v1302_v12 }
 0x588   : > { %v1304_v13 = vpop.xlane.xlu1 %1303 }
 0x589   : > { %v1305_v14 = vmul.f32 %v1304_v13, %v2038_v8 }
 0x58b   : > { %v1306_v15 = vsub.f32 %v2189_v11, %v1305_v14 }
 0x58d   : > { %v1307_v16 = vmul.f32 %v1306_v15, %v1306_v15 }
 0x58f   : > { %v1308_v17 = vsel %vm568_vm0, %v1307_v16, 0.0 }
 0x590   : > { %1309 = vadd.xlane.f32.xlu2 %v1308_v17 }
 0x603   : > { %v1310_v19 = vpop.xlane.xlu2 %1309 }
 0x604   : > { %v1311_v20 = vmul.f32 %v1310_v19, %v2038_v8  ;;  %v1741_v8 = vld [vmem:[%s2273_s11] ss:$0 sm:$0xff] }
 0x606   : > { %v1312_v21 = vadd.f32 1e-05, %v1311_v20 }
 0x608   : > { %1764 = vrsqrt.f32 %v1312_v21  ;;  %vm1319_vm8 = vweird.f32 %v1312_v21 }
 0x60e   : > { %v1765_v22 = vpop.eup %1764 }
 0x60f   : > { %v1314_v23 = vmul.f32 %v1765_v22, %v1312_v21  ;;  %vm1320_vm7 = vweird.f32 %v1765_v22 }
 0x610   : > { %vm1321_vm9 = vmor %vm1319_vm8, %vm1320_vm7 }
 0x611   : > { %v1315_v25 = vmul.f32 %v1765_v22, %v1314_v23 }
 0x613   : > { %v1316_v26 = vmul.f32 0.5, %v1315_v25 }
 0x615   : > { %v1317_v27 = vsub.f32 1.5, %v1316_v26 }
 0x617   : > { %v1318_v28 = vmul.f32 %v1765_v22, %v1317_v27 }
 0x619   : > { %v1322_v30 = vsel %vm1321_vm9, %v1765_v22, %v1318_v28 }
 0x61a   : > { %v1323_v31 = vmul.f32 %v1322_v30, %v1306_v15 }
 0x61c   : > { %v1327_v32 = vmul.f32 %v1740_v29, %v1323_v31 }
 0x61e   : > { %v1331_v33 = vadd.f32 %v1741_v8, %v1327_v32 }
 0x620   : > { %v1332_v24 = vpack.c.bf16 %v1331_v33, %v1331_v33 }
 0x622   : > { %1634 = vmatmul.msk.bf16.vlgmr.msra.gmra.mxu1 %vm568_vm0, %v1332_v24 }
 0x69f   : > { %v1365_v39 = vpop.f32.mrf.mxu1 }
 0x6a0   : > { %v1366_v40 = vadd.f32 %v1742_v37, %v1365_v39 }
 0x6a2   : > { %v1635_v41 = vmul.f32 -1.442695, %v1366_v40 }
 0x6a4   : > { %1766 = vpow2.f32 %v1635_v41 }
 0x6a7   : > { %v1367_v42 = vpop.f32.mrf.mxu1 }
 0x6aa   : > { %v1767_v43 = vpop.eup %1766 }
 0x6ab   : > { %v1372_v44 = vadd.f32 1.0, %v1767_v43 }
 0x6ad   : > { %1768 = vrcp.f32 %v1372_v44  ;;  %v1384_v49 = vand.u32 2147483648, %v1372_v44  ;;  %v1382_v51 = vand.u32 2147483647, %v1372_v44  ;;  %vm1378_vm11 = vweird.f32 %v1372_v44 }
 0x6af   : > { %v1385_v53 = vor.u32 1.1754944e-38, %v1384_v49  ;;  %vm1383_vm13 = vcmp.eq.f32.partialorder %v1382_v51, 8.507059e+37 }
 0x6b3   : > { %v1769_v45 = vpop.eup %1768 }
 0x6b4   : > { %v1374_v47 = vmul.f32 %v1769_v45, %v1372_v44  ;;  %vm1379_vm10 = vweird.f32 %v1769_v45 }
 0x6b5   : > { %vm1380_vm12 = vmor %vm1378_vm11, %vm1379_vm10 }
 0x6b6   : > { %v1375_v48 = vsub.f32 1.0, %v1374_v47 }
 0x6b8   : > { %v1376_v50 = vmul.f32 %v1769_v45, %v1375_v48 }
 0x6ba   : > { %v1377_v52 = vadd.f32 %v1769_v45, %v1376_v50 }
 0x6bc   : > { %v1381_v54 = vsel %vm1380_vm12, %v1769_v45, %v1377_v52 }
 0x6bd   : > { %v1386_v55 = vsel %vm1383_vm13, %v1385_v53, %v1381_v54 }
 0x6be   : > { %v1388_v56 = vmul.f32 %v1386_v55, %v1366_v40 }
 0x6c0   : > { %v1389_v57 = vpack.c.bf16 %v1388_v56, %v1388_v56 }
 0x6c2   : > { %1652 = vmatmul.msk.bf16.vlgmr.msra.gmra.mxu2 %vm1426_vm14, %v1389_v57 }
 0x745   : > { %v1439_v46 = vpop.f32.mrf.mxu2 }
 0x746   : > { %v1440_v59 = vadd.f32 %v1743_v58, %v1439_v46 }
 0x748   : > { %v1443_v60 = vadd.f32 %v1440_v59, %v2189_v11 }
 0x74a   : > { %1444 = vst.msk [vmem:[%s554_s23] sm:$0xff] %vm568_vm0, %v1443_v60 }
 0x74b   : > { %1827 = shalt.err (!%p1824_p8)
}
 0x74c   : > { %1679 = dma.vmem_to_hbm [thread:$0]  (%p1999_p5), %s1459_s18, 128, %s1461_s2, %s1446_s25  }
 0x74d   : > { %v1441_v61 = vpop.f32.mrf.mxu2 }
 0x74e PF: > { %p1696_p9 = scmp.ge.s32.totalorder %s1870_s24, 2  ;;  %s1472_s3 = sand.u32 1, %s1858_s21  }
 0x74f   : > { %s1473_s29 = scalar_lea.sflag [#allocation3], %s1472_s3 }
 0x750   : > { %p1689_p10 = pnand %p1696_p9, %p2003_p6 }
 0x752   : > { %p1690_p11 = pneg %p1689_p10 }
 0x754   : > { %1853 = dma.done.wait (%p1690_p11), %s1473_s29, 128  }
 0x755   : > { %1855 = vsyncadd (%p1690_p11), %s1473_s29, 4294967168  ;;  %s2294_s1 = sld [smem:[#allocation11_spill]]  ;;  %p28_p12 = scmp.ge.s32.totalorder %s1986_s27, 4  }
 0x756   : > { %s2295_s23 = sld [smem:[#allocation12_spill]]  ;;  %s2296_s21 = smov %s1862_s22 }
 0x757   : > { %s2298_s24 = smov %s1986_s27  ;;  %30 = sbr.rel (!%p28_p12) target bundleno = 11 (0xb), region = 131 }
 0x75b   : > { %s2297_s22 = smov %s2294_s1 }
 0x75c   :  { %1479 = vsyncpa [#allocation3], 1 }
 0x75d   :  { %1481 = vsyncpa [#allocation3 + $0x1], 1 }
 0x75e   :  { %1482 = vsyncpa [#allocation4], 1 }
 0x75f   :  { %1484 = vsyncpa [#allocation4 + $0x1], 1 }
 0x760   :  { %1485 = vsyncpa [#allocation6], 1 }

</bundles_post_ra>
